<compile_context>
chip_gen: v7x
topology: tpu7x:2x2x1
jax: 0.10.0
libtpu: 0.0.40
codegen_flags: <defaults>
</compile_context>

<pallas_src>
import functools

import jax
import jax.numpy as jnp
from jax.experimental import pallas as pl
from jax.experimental.pallas import tpu as pltpu


def sobel_kernel(x_ref, w_ref, o_ref, *, row_stride, cout):
    # x_ref : (1, Cin, FLAT)    zero-padded input, channel-major, spatially
    #                           flattened with row stride `row_stride` (=W+2).
    # w_ref : (9, 2*Cout, Cin)  convx/convy fused along out-channels, one
    #                           (2*Cout, Cin) matrix per 3x3 tap.
    # o_ref : (1, Cout, M)      M = H*(W+2): lane-dense, NCHW-native output at
    #                           row stride W+2 (2 junk cols/row dropped later).
    x = x_ref[0]                                  # (Cin, FLAT)
    m = o_ref.shape[2]

    acc = jnp.zeros((2 * cout, m), jnp.float32)   # single fused accumulator
    for dy in range(3):
        for dx in range(3):
            off = dy * row_stride + dx
            patch = x[:, off:off + m]             # contiguous flat-offset slice
            acc = acc + jnp.dot(w_ref[dy * 3 + dx], patch,
                                preferred_element_type=jnp.float32)

    edge = jnp.abs(acc[:cout]) + jnp.abs(acc[cout:])   # |convx| + |convy|
    o_ref[0] = edge.astype(o_ref.dtype)


def sobel_conv(x_nchw, wx_oihw, wy_oihw):
    """Matches SobelConv.forward: |convx(x)| + |convy(x)|, NCHW in/out."""
    N, C, H, W = x_nchw.shape
    Cout = wx_oihw.shape[0]
    Wp = W + 2                   # padded row stride
    M = H * Wp                   # rows computed per image (incl. 2 junk cols/row)
    FLAT = (H + 3) * Wp          # one extra zero row keeps the last taps in-bounds

    # Single pad op, no transpose: stay NCHW / channel-major, flatten spatially.
    # TODO(synk): the zero-padding could be moved into the kernel via a
    # zero-initialized VMEM scratch to save this one HBM pass.
    x_flat = jnp.pad(x_nchw, ((0, 0), (0, 0), (1, 2), (1, 1))).reshape(N, C, FLAT)

    # Fuse convx / convy along the output-channel dim: (9, 2*Cout, Cin).
    w_fused = jnp.concatenate([wx_oihw, wy_oihw], axis=0)          # (2C, C, 3, 3)
    w_fused = jnp.transpose(w_fused, (2, 3, 0, 1)).reshape(9, 2 * Cout, C)

    kernel = functools.partial(sobel_kernel, row_stride=Wp, cout=Cout)

    out_flat = pl.pallas_call(
        kernel,
        out_shape=jax.ShapeDtypeStruct((N, Cout, M), x_nchw.dtype),
        grid_spec=pltpu.PrefetchScalarGridSpec(
            num_scalar_prefetch=0,
            grid=(N,),
            in_specs=[
                pl.BlockSpec((1, C, FLAT), lambda n: (n, 0, 0)),
                pl.BlockSpec((9, 2 * Cout, C), lambda n: (0, 0, 0)),
            ],
            out_specs=pl.BlockSpec((1, Cout, M), lambda n: (n, 0, 0)),
        ),
        compiler_params=pltpu.CompilerParams(
            dimension_semantics=("parallel",)),
    )(x_flat, w_fused)

    # Drop the 2 wrap-around columns per row; result is already NCHW.
    return out_flat.reshape(N, Cout, H, Wp)[:, :, :, :W]


def _reference(x_nchw, wx_oihw, wy_oihw):
    dn = ("NCHW", "OIHW", "NCHW")
    conv = lambda w: jax.lax.conv_general_dilated(
        x_nchw, w, window_strides=(1, 1), padding=((1, 1), (1, 1)),
        dimension_numbers=dn)
    return jnp.abs(conv(wx_oihw)) + jnp.abs(conv(wy_oihw))


if __name__ == "__main__":
    key = jax.random.PRNGKey(0)
    k_x, k_wx, k_wy = jax.random.split(key, 3)

    N, C, H, W = 2, 31, 16, 16   # in_channel is hardwired to 31 in the module
    x = jax.random.normal(k_x, (N, C, H, W), dtype=jnp.float32)
    # Conv2d weight shapes: (out_channels=31, in_channels=31, 3, 3)
    wx = jax.random.normal(k_wx, (C, C, 3, 3), dtype=jnp.float32) * 0.1
    wy = jax.random.normal(k_wy, (C, C, 3, 3), dtype=jnp.float32) * 0.1

    out = jax.block_until_ready(sobel_conv(x, wx, wy))

    ref = _reference(x, wx, wy)
    assert out.shape == (N, C, H, W)
    assert jnp.allclose(out, ref, rtol=1e-3, atol=1e-3), "mismatch vs reference"

    print("KERNEL_OK")
</pallas_src>

<mosaic_0001>
module attributes {stable_mosaic.version = 11 : i64} {
  func.func @sobel_kernel(%arg0: i32, %arg1: memref<1x31x342xf32, #tpu.memory_space<vmem>>, %arg2: memref<9x62x31xf32, #tpu.memory_space<vmem>>, %arg3: memref<1x31x288xf32, #tpu.memory_space<vmem>>) attributes {dimension_semantics = [#tpu.dimension_semantics<parallel>], iteration_bounds = array<i64: 2>, scalar_prefetch = 0 : i64, scratch_operands = 0 : i64, tpu.core_type = #tpu.core_type<tc>, window_params = [{transform_indices = @transform_0, window_bounds = array<i64: 1, 31, 342>}, {pipeline_mode = #tpu.pipeline_mode<synchronous>, transform_indices = @transform_1, window_bounds = array<i64: 9, 62, 31>}, {transform_indices = @transform_2, window_bounds = array<i64: 1, 31, 288>}]} {
    %c0 = arith.constant 0 : index
    %c0_0 = arith.constant 0 : index
    %c0_1 = arith.constant 0 : index
    %0 = vector.load %arg1[%c0, %c0_0, %c0_1] : memref<1x31x342xf32, #tpu.memory_space<vmem>>, vector<1x31x342xf32>
    %1 = vector.shape_cast %0 : vector<1x31x342xf32> to vector<31x342xf32>
    %cst = arith.constant 0.000000e+00 : f32
    %2 = vector.broadcast %cst : f32 to vector<62x288xf32>
    %3 = vector.extract_strided_slice %1 {offsets = [0, 0], sizes = [31, 288], strides = [1, 1]} : vector<31x342xf32> to vector<31x288xf32>
    %c0_2 = arith.constant 0 : index
    %c0_3 = arith.constant 0 : index
    %c0_4 = arith.constant 0 : index
    %4 = vector.load %arg2[%c0_2, %c0_3, %c0_4] : memref<9x62x31xf32, #tpu.memory_space<vmem>>, vector<1x62x31xf32>
    %5 = vector.shape_cast %4 : vector<1x62x31xf32> to vector<62x31xf32>
    %cst_5 = arith.constant dense<0.000000e+00> : vector<62x288xf32>
    %6 = tpu.matmul %5, %3, %cst_5 {dimension_numbers = #tpu.dot_dimension_numbers<[1], [0], [0], [1], [0, 0, 1, 1], [], []>} : vector<62x31xf32>, vector<31x288xf32>, vector<62x288xf32> -> vector<62x288xf32>
    %7 = arith.addf %2, %6 : vector<62x288xf32>
    %8 = vector.extract_strided_slice %1 {offsets = [0, 1], sizes = [31, 288], strides = [1, 1]} : vector<31x342xf32> to vector<31x288xf32>
    %c1 = arith.constant 1 : index
    %c0_6 = arith.constant 0 : index
    %c0_7 = arith.constant 0 : index
    %9 = vector.load %arg2[%c1, %c0_6, %c0_7] : memref<9x62x31xf32, #tpu.memory_space<vmem>>, vector<1x62x31xf32>
    %10 = vector.shape_cast %9 : vector<1x62x31xf32> to vector<62x31xf32>
    %cst_8 = arith.constant dense<0.000000e+00> : vector<62x288xf32>
    %11 = tpu.matmul %10, %8, %cst_8 {dimension_numbers = #tpu.dot_dimension_numbers<[1], [0], [0], [1], [0, 0, 1, 1], [], []>} : vector<62x31xf32>, vector<31x288xf32>, vector<62x288xf32> -> vector<62x288xf32>
    %12 = arith.addf %7, %11 : vector<62x288xf32>
    %13 = vector.extract_strided_slice %1 {offsets = [0, 2], sizes = [31, 288], strides = [1, 1]} : vector<31x342xf32> to vector<31x288xf32>
    %c2 = arith.constant 2 : index
    %c0_9 = arith.constant 0 : index
    %c0_10 = arith.constant 0 : index
    %14 = vector.load %arg2[%c2, %c0_9, %c0_10] : memref<9x62x31xf32, #tpu.memory_space<vmem>>, vector<1x62x31xf32>
    %15 = vector.shape_cast %14 : vector<1x62x31xf32> to vector<62x31xf32>
    %cst_11 = arith.constant dense<0.000000e+00> : vector<62x288xf32>
    %16 = tpu.matmul %15, %13, %cst_11 {dimension_numbers = #tpu.dot_dimension_numbers<[1], [0], [0], [1], [0, 0, 1, 1], [], []>} : vector<62x31xf32>, vector<31x288xf32>, vector<62x288xf32> -> vector<62x288xf32>
    %17 = arith.addf %12, %16 : vector<62x288xf32>
    %18 = vector.extract_strided_slice %1 {offsets = [0, 18], sizes = [31, 288], strides = [1, 1]} : vector<31x342xf32> to vector<31x288xf32>
    %c3 = arith.constant 3 : index
    %c0_12 = arith.constant 0 : index
    %c0_13 = arith.constant 0 : index
    %19 = vector.load %arg2[%c3, %c0_12, %c0_13] : memref<9x62x31xf32, #tpu.memory_space<vmem>>, vector<1x62x31xf32>
    %20 = vector.shape_cast %19 : vector<1x62x31xf32> to vector<62x31xf32>
    %cst_14 = arith.constant dense<0.000000e+00> : vector<62x288xf32>
    %21 = tpu.matmul %20, %18, %cst_14 {dimension_numbers = #tpu.dot_dimension_numbers<[1], [0], [0], [1], [0, 0, 1, 1], [], []>} : vector<62x31xf32>, vector<31x288xf32>, vector<62x288xf32> -> vector<62x288xf32>
    %22 = arith.addf %17, %21 : vector<62x288xf32>
    %23 = vector.extract_strided_slice %1 {offsets = [0, 19], sizes = [31, 288], strides = [1, 1]} : vector<31x342xf32> to vector<31x288xf32>
    %c4 = arith.constant 4 : index
    %c0_15 = arith.constant 0 : index
    %c0_16 = arith.constant 0 : index
    %24 = vector.load %arg2[%c4, %c0_15, %c0_16] : memref<9x62x31xf32, #tpu.memory_space<vmem>>, vector<1x62x31xf32>
    %25 = vector.shape_cast %24 : vector<1x62x31xf32> to vector<62x31xf32>
    %cst_17 = arith.constant dense<0.000000e+00> : vector<62x288xf32>
    %26 = tpu.matmul %25, %23, %cst_17 {dimension_numbers = #tpu.dot_dimension_numbers<[1], [0], [0], [1], [0, 0, 1, 1], [], []>} : vector<62x31xf32>, vector<31x288xf32>, vector<62x288xf32> -> vector<62x288xf32>
    %27 = arith.addf %22, %26 : vector<62x288xf32>
    %28 = vector.extract_strided_slice %1 {offsets = [0, 20], sizes = [31, 288], strides = [1, 1]} : vector<31x342xf32> to vector<31x288xf32>
    %c5 = arith.constant 5 : index
    %c0_18 = arith.constant 0 : index
    %c0_19 = arith.constant 0 : index
    %29 = vector.load %arg2[%c5, %c0_18, %c0_19] : memref<9x62x31xf32, #tpu.memory_space<vmem>>, vector<1x62x31xf32>
    %30 = vector.shape_cast %29 : vector<1x62x31xf32> to vector<62x31xf32>
    %cst_20 = arith.constant dense<0.000000e+00> : vector<62x288xf32>
    %31 = tpu.matmul %30, %28, %cst_20 {dimension_numbers = #tpu.dot_dimension_numbers<[1], [0], [0], [1], [0, 0, 1, 1], [], []>} : vector<62x31xf32>, vector<31x288xf32>, vector<62x288xf32> -> vector<62x288xf32>
    %32 = arith.addf %27, %31 : vector<62x288xf32>
    %33 = vector.extract_strided_slice %1 {offsets = [0, 36], sizes = [31, 288], strides = [1, 1]} : vector<31x342xf32> to vector<31x288xf32>
    %c6 = arith.constant 6 : index
    %c0_21 = arith.constant 0 : index
    %c0_22 = arith.constant 0 : index
    %34 = vector.load %arg2[%c6, %c0_21, %c0_22] : memref<9x62x31xf32, #tpu.memory_space<vmem>>, vector<1x62x31xf32>
    %35 = vector.shape_cast %34 : vector<1x62x31xf32> to vector<62x31xf32>
    %cst_23 = arith.constant dense<0.000000e+00> : vector<62x288xf32>
    %36 = tpu.matmul %35, %33, %cst_23 {dimension_numbers = #tpu.dot_dimension_numbers<[1], [0], [0], [1], [0, 0, 1, 1], [], []>} : vector<62x31xf32>, vector<31x288xf32>, vector<62x288xf32> -> vector<62x288xf32>
    %37 = arith.addf %32, %36 : vector<62x288xf32>
    %38 = vector.extract_strided_slice %1 {offsets = [0, 37], sizes = [31, 288], strides = [1, 1]} : vector<31x342xf32> to vector<31x288xf32>
    %c7 = arith.constant 7 : index
    %c0_24 = arith.constant 0 : index
    %c0_25 = arith.constant 0 : index
    %39 = vector.load %arg2[%c7, %c0_24, %c0_25] : memref<9x62x31xf32, #tpu.memory_space<vmem>>, vector<1x62x31xf32>
    %40 = vector.shape_cast %39 : vector<1x62x31xf32> to vector<62x31xf32>
    %cst_26 = arith.constant dense<0.000000e+00> : vector<62x288xf32>
    %41 = tpu.matmul %40, %38, %cst_26 {dimension_numbers = #tpu.dot_dimension_numbers<[1], [0], [0], [1], [0, 0, 1, 1], [], []>} : vector<62x31xf32>, vector<31x288xf32>, vector<62x288xf32> -> vector<62x288xf32>
    %42 = arith.addf %37, %41 : vector<62x288xf32>
    %43 = vector.extract_strided_slice %1 {offsets = [0, 38], sizes = [31, 288], strides = [1, 1]} : vector<31x342xf32> to vector<31x288xf32>
    %c8 = arith.constant 8 : index
    %c0_27 = arith.constant 0 : index
    %c0_28 = arith.constant 0 : index
    %44 = vector.load %arg2[%c8, %c0_27, %c0_28] : memref<9x62x31xf32, #tpu.memory_space<vmem>>, vector<1x62x31xf32>
    %45 = vector.shape_cast %44 : vector<1x62x31xf32> to vector<62x31xf32>
    %cst_29 = arith.constant dense<0.000000e+00> : vector<62x288xf32>
    %46 = tpu.matmul %45, %43, %cst_29 {dimension_numbers = #tpu.dot_dimension_numbers<[1], [0], [0], [1], [0, 0, 1, 1], [], []>} : vector<62x31xf32>, vector<31x288xf32>, vector<62x288xf32> -> vector<62x288xf32>
    %47 = arith.addf %42, %46 : vector<62x288xf32>
    %48 = vector.extract_strided_slice %47 {offsets = [0, 0], sizes = [31, 288], strides = [1, 1]} : vector<62x288xf32> to vector<31x288xf32>
    %49 = math.absf %48 : vector<31x288xf32>
    %50 = vector.extract_strided_slice %47 {offsets = [31, 0], sizes = [31, 288], strides = [1, 1]} : vector<62x288xf32> to vector<31x288xf32>
    %51 = math.absf %50 : vector<31x288xf32>
    %52 = arith.addf %49, %51 : vector<31x288xf32>
    %c0_30 = arith.constant 0 : index
    %c0_31 = arith.constant 0 : index
    %c0_32 = arith.constant 0 : index
    %53 = vector.load %arg3[%c0_30, %c0_31, %c0_32] : memref<1x31x288xf32, #tpu.memory_space<vmem>>, vector<1x31x288xf32>
    %54 = vector.shape_cast %53 : vector<1x31x288xf32> to vector<31x288xf32>
    %55 = vector.shape_cast %52 : vector<31x288xf32> to vector<1x31x288xf32>
    tpu.vector_store %arg3[%c0_30, %c0_31, %c0_32], %55 {strides = array<i32>} : memref<1x31x288xf32, #tpu.memory_space<vmem>>, vector<1x31x288xf32>,
    return
  }
  func.func @transform_0(%arg0: i32) -> (i32, i32, i32) {
    %c0_i32 = arith.constant 0 : i32
    %c0_i32_0 = arith.constant 0 : i32
    %c0_i32_1 = arith.constant 0 : i32
    return %arg0, %c0_i32, %c0_i32_0 : i32, i32, i32
  }
  func.func @transform_1(%arg0: i32) -> (i32, i32, i32) {
    %c0_i32 = arith.constant 0 : i32
    %c0_i32_0 = arith.constant 0 : i32
    %c0_i32_1 = arith.constant 0 : i32
    %c0_i32_2 = arith.constant 0 : i32
    return %c0_i32, %c0_i32_0, %c0_i32_1 : i32, i32, i32
  }
  func.func @transform_2(%arg0: i32) -> (i32, i32, i32) {
    %c0_i32 = arith.constant 0 : i32
    %c0_i32_0 = arith.constant 0 : i32
    %c0_i32_1 = arith.constant 0 : i32
    return %arg0, %c0_i32, %c0_i32_0 : i32, i32, i32
  }
}

</mosaic_0001>

<bundles_post_ra>
// kernel: tpu_custom_call.1
= control target key start
LH: loop header
LB: loop body
LE: loop exit
PB: predicated region body
PF: predicated region fallthrough
CT: control target
= control target key end

     0   :  { %s4346_s9 = smov 0   ;;  %s5527_s0 = inlined_call_operand.vmem [shape: f32[2,31,342], index: 0, kind: input, shape index: {}]   ;;  %s5528_s1 = inlined_call_operand.vmem [shape: f32[9,62,31], index: 1, kind: input, shape index: {}]   ;;  %s5529_s2 = inlined_call_operand.vmem [shape: f32[2,31,288], index: 2, kind: output, shape index: {}]  }
   0x1 LB: > { %s3146_s10 = sadd.s32 4294967295, %s4319_s9   ;;  %p3150_p0 = scmp.ge.s32.totalorder %s4319_s9, 1  ;;  %s4319_s9 = sphi %s4346_s9, %s12_s9  }
   0x2   : > { %p112_p1 = scmp.lt.s32.totalorder %s4319_s9, 3 }
   0x4   : > { %p113_p2 = pnand %p3150_p0, %p112_p1 }
   0x5   : > { %p134_p3 = scmp.lt.s32.totalorder (!%p113_p2), %s3146_s10, 1  ;;  %s4321_s15 = smov (!%p113_p2), 126   ;;  %v4323_v17 = vmov (!%p113_p2), 0.0   ;;  %vm758_vm0 = vcmask (!%p113_p2), 1031168   ;;  %vm209_vm1 = vcmask (!%p113_p2), 1039360   ;;  %vm252_vm2 = vcmask (!%p113_p2), 1046528  }
   0x6   : > { %116 = sbr.rel (%p113_p2) target bundleno = 598 (0x256), region = 28  ;;  %s4322_s16 = smov (!%p113_p2), 127   ;;  %870 = vmatprep.mubr.f32.mxu0 (!%p113_p2), %v4323_v17  ;;  %323 = vmatprep.mubr.f32.mxu1 (!%p113_p2), %v4323_v17  ;;  %vm4330_vm3 = vmmov (!%p113_p2), 1   ;;  %vm227_vm5 = vcmask (!%p113_p2), 252928   ;;  %vm1081_vm6 = vcmask (!%p113_p2), 900096   ;;  %vm1404_vm7 = vcmask (!%p113_p2), 891904  }
   0x7   : > { %s4324_s17 = smov (!%p113_p2), 110   ;;  %s4325_s18 = smov (!%p113_p2), 109   ;;  %vm4464_vm4 = vmpackc.low (!%p113_p2), %vm252_vm2, %vm4330_vm3  ;;  %vm1727_vm8 = vcmask (!%p113_p2), 883712   ;;  %vm2050_vm9 = vcmask (!%p113_p2), 752640   ;;  %vm2373_vm10 = vcmask (!%p113_p2), 744448   ;;  %vm2696_vm11 = vcmask (!%p113_p2), 736256  }
   0x8   : > { %s4326_s19 = smov (!%p113_p2), 108   ;;  %s4327_s20 = smov (!%p113_p2), 92   ;;  %vm3025_vm12 = vcmask (!%p113_p2), 1040384   ;;  %vm3079_vm13 = vcmask (!%p113_p2), 261120   ;;  %vm3089_vm14 = vcmask (!%p113_p2), 260096  }
   0x9   : > { %s4328_s21 = smov (!%p113_p2), 91   ;;  %s4329_s22 = smov (!%p113_p2), 90  }
   0xd   : > { %s5539_s10 = smov (!%p134_p3, %s3146_s10), 1 }
   0xe   : > { %s4054_s11 = smul.u32 96, %s5539_s10 }
  0x10   : > { %s138_s14 = scalar_lea.vmem %s5527_s0, %s4054_s11 }
  0x11   : > { %v4362_v0 = vld [vmem:[%s138_s14 + $0x8] sm:$0xff]  ;;  %v146_v1 = vld [vmem:[%s138_s14 + $0x10] sm:$0xff]  ;;  %v4364_v2 = vld [vmem:[%s138_s14] sm:$0xff] }
  0x12   : > { %v4367_v3 = vpack.i.bf16 %v146_v1, %v4362_v0  ;;  %v4369_v4 = vld [vmem:[%s138_s14 + $0x18] sm:$0xff]  ;;  %v4371_v5 = vld [vmem:[%s138_s14 + $0x20] sm:$0xff]  ;;  %v149_v6 = vld [vmem:[%s138_s14 + $0x28] sm:$0xff] }
  0x13   : > { %v4375_v7 = vpack.i.bf16 %v4369_v4, %v4364_v2  ;;  %v4379_v8 = vpack.i.bf16 %v149_v6, %v4371_v5  ;;  %v4384_v9 = vld [vmem:[%s138_s14 + $0x38] sm:$0xff]  ;;  %v4386_v10 = vld [vmem:[%s138_s14 + $0x40] sm:$0xff]  ;;  %v4388_v11 = vld [vmem:[%s138_s14 + $0x50] sm:$0x7f]  ;;  %v3698_v19 = vpack.c.bf16 %v4371_v5, %v4362_v0  ;;  %v3700_v20 = vpack.c.bf16 %v4369_v4, %v4364_v2 }
  0x14   : > { %4074 = vrot.lane.b32.xlu0 %v4367_v3, %s4321_s15  ;;  %v4390_v12 = vld [vmem:[%s138_s14 + $0x58] sm:$0x7f]  ;;  %v4103_v13 = vpack.i.bf16 %v4386_v10, %v4384_v9  ;;  %v4398_v15 = vld [vmem:[%s138_s14 + $0x30] sm:$0xff]  ;;  %v4400_v16 = vld [vmem:[%s138_s14 + $0x48] sm:$0x7f]  ;;  %v3702_v21 = vpack.c.bf16 %v4388_v11, %v4384_v9  ;;  %v4425_v23 = vpack.c.bf16 %v149_v6, %v146_v1 }
  0x15   : > { %4084 = vrot.lane.b32.xlu1 %v4375_v7, %s4321_s15  ;;  %v4108_v14 = vpack.i.bf16 %v4390_v12, %v4388_v11  ;;  %v4113_v18 = vpack.i.bf16 %v4400_v16, %v4398_v15  ;;  %v3705_v22 = vpack.c.bf16 %v4400_v16, %v4398_v15  ;;  %v4575_v5 = vld [vmem:[%s5528_s1 + $0x58] sm:$0xff]  ;;  %v4741_v2 = vld [vmem:[%s5528_s1 + $0xe8] sm:$0xff]  ;;  %v4765_v15 = vld [vmem:[%s5528_s1 + $0xf0] sm:$0xff] }
  0x18   : > { %4079 = vrot.lane.b32.xlu0 %v4379_v8, %s4321_s15 }
  0x19   : > { %4089 = vrot.lane.b32.xlu1 %v4367_v3, %s4322_s16 }
  0x1c   : > { %4094 = vrot.lane.b32.xlu0 %v4379_v8, %s4322_s16 }
  0x1d   : > { %4099 = vrot.lane.b32.xlu1 %v4375_v7, %s4322_s16 }
  0x20   : > { %4104 = vrot.lane.b32.xlu0 %v4103_v13, %s4321_s15 }
  0x21   : > { %4109 = vrot.lane.b32.xlu1 %v4108_v14, %s4321_s15 }
  0x24   : > { %4114 = vrot.lane.b32.xlu0 %v4113_v18, %s4321_s15 }
  0x25   : > { %4119 = vrot.lane.b32.xlu1 %v4103_v13, %s4322_s16 }
  0x28   : > { %4124 = vrot.lane.b32.xlu0 %v4108_v14, %s4322_s16 }
  0x29   : > { %4129 = vrot.lane.b32.xlu1 %v4113_v18, %s4322_s16 }
  0x2c   : > { %4134 = vrot.lane.b32.xlu0 %v4367_v3, %s4324_s17 }
  0x2d   : > { %4139 = vrot.lane.b32.xlu1 %v4379_v8, %s4324_s17 }
  0x30   : > { %4144 = vrot.lane.b32.xlu0 %v4375_v7, %s4324_s17 }
  0x31   : > { %4149 = vrot.lane.b32.xlu1 %v4103_v13, %s4324_s17 }
  0x34   : > { %4154 = vrot.lane.b32.xlu0 %v4108_v14, %s4324_s17 }
  0x35   : > { %4159 = vrot.lane.b32.xlu1 %v4113_v18, %s4324_s17 }
  0x38   : > { %4164 = vrot.lane.b32.xlu0 %v4367_v3, %s4325_s18 }
  0x39   : > { %4169 = vrot.lane.b32.xlu1 %v4379_v8, %s4325_s18 }
  0x3c   : > { %4174 = vrot.lane.b32.xlu0 %v4375_v7, %s4325_s18 }
  0x3d   : > { %4179 = vrot.lane.b32.xlu1 %v4103_v13, %s4325_s18 }
  0x40   : > { %4184 = vrot.lane.b32.xlu0 %v4108_v14, %s4325_s18 }
  0x41   : > { %4189 = vrot.lane.b32.xlu1 %v4113_v18, %s4325_s18 }
  0x44   : > { %4194 = vrot.lane.b32.xlu0 %v4367_v3, %s4326_s19 }
  0x45   : > { %4199 = vrot.lane.b32.xlu1 %v4379_v8, %s4326_s19 }
  0x48   : > { %4204 = vrot.lane.b32.xlu0 %v4375_v7, %s4326_s19 }
  0x49   : > { %4209 = vrot.lane.b32.xlu1 %v4103_v13, %s4326_s19 }
  0x4c   : > { %4214 = vrot.lane.b32.xlu0 %v4108_v14, %s4326_s19 }
  0x4d   : > { %4219 = vrot.lane.b32.xlu1 %v4113_v18, %s4326_s19  ;;  %s5479_s19 = scalar_lea.vmem %s5529_s2, %s4054_s11 }
  0x50   : > { %4224 = vrot.lane.b32.xlu0 %v4367_v3, %s4327_s20 }
  0x51   : > { %4229 = vrot.lane.b32.xlu1 %v4379_v8, %s4327_s20 }
  0x54   : > { %4234 = vrot.lane.b32.xlu0 %v4375_v7, %s4327_s20 }
  0x55   : > { %4239 = vrot.lane.b32.xlu1 %v4103_v13, %s4327_s20 }
  0x58   : > { %4244 = vrot.lane.b32.xlu0 %v4108_v14, %s4327_s20 }
  0x59   : > { %4249 = vrot.lane.b32.xlu1 %v4113_v18, %s4327_s20 }
  0x5c   : > { %4254 = vrot.lane.b32.xlu0 %v4367_v3, %s4328_s21 }
  0x5d   : > { %4259 = vrot.lane.b32.xlu1 %v4379_v8, %s4328_s21 }
  0x60   : > { %4264 = vrot.lane.b32.xlu0 %v4375_v7, %s4328_s21 }
  0x61   : > { %4269 = vrot.lane.b32.xlu1 %v4103_v13, %s4328_s21 }
  0x64   : > { %4274 = vrot.lane.b32.xlu0 %v4108_v14, %s4328_s21 }
  0x65   : > { %4279 = vrot.lane.b32.xlu1 %v4113_v18, %s4328_s21 }
  0x68   : > { %4284 = vrot.lane.b32.xlu0 %v4367_v3, %s4329_s22  ;;  %v3366_v3 = vld [vmem:[%s5528_s1 + $0x228] sm:$0xff] }
  0x69   : > { %4289 = vrot.lane.b32.xlu1 %v4379_v8, %s4329_s22 }
  0x6c   : > { %4294 = vrot.lane.b32.xlu0 %v4375_v7, %s4329_s22 }
  0x6d   : > { %4299 = vrot.lane.b32.xlu1 %v4103_v13, %s4329_s22 }
  0x70   : > { %4304 = vrot.lane.b32.xlu0 %v4108_v14, %s4329_s22 }
  0x71   : > { %4309 = vrot.lane.b32.xlu1 %v4113_v18, %s4329_s22 }
  0x86   : > { %v4075_v24 = vpop.permute.xlu0 %4074 }
  0x87   : > { %v4085_v25 = vpop.permute.xlu1 %4084  ;;  %v4077_v26 = vunpack.i.h.bf16 %v4075_v24  ;;  %v4076_v27 = vunpack.i.l.bf16 %v4075_v24 }
  0x88   : > { %v4086_v28 = vunpack.i.l.bf16 %v4085_v25  ;;  %v4087_v30 = vunpack.i.h.bf16 %v4085_v25 }
  0x89   : > { %v760_v35 = vsel %vm758_vm0, %v4076_v27, %v4077_v26 }
  0x8a   : > { %v4080_v29 = vpop.permute.xlu0 %4079  ;;  %v759_v36 = vsel %vm758_vm0, %v4086_v28, %v4076_v27 }
  0x8b   : > { %v4082_v31 = vunpack.i.h.bf16 %v4080_v29  ;;  %v4081_v32 = vunpack.i.l.bf16 %v4080_v29  ;;  %v4434_v33 = vpop.permute.xlu1 %4089 }
  0x8c   : > { %v4092_v34 = vunpack.i.h.bf16 %v4434_v33  ;;  %v4091_v38 = vunpack.i.l.bf16 %v4434_v33  ;;  %v4506_v33 = vld [vmem:[%s5528_s1 + $0x40] sm:$0xff] }
  0x8d   : > { %v4439_v37 = vpack.c.bf16 %v4082_v31, %v4077_v26  ;;  %v762_v39 = vsel %vm758_vm0, %v4081_v32, %v4082_v31  ;;  %v761_v40 = vsel %vm758_vm0, %v4087_v30, %v4081_v32 }
  0x8e   : > { %v4444_v41 = vpop.permute.xlu0 %4094  ;;  %v4446_v42 = vpack.c.bf16 %v762_v39, %v760_v35  ;;  %v4448_v43 = vpack.c.bf16 %v761_v40, %v759_v36  ;;  %v211_v49 = vsel %vm209_vm1, %v4091_v38, %v4092_v34  ;;  %v4483_v35 = vld [vmem:[%s5528_s1 + $0x80] sm:$0xff] }
  0x8f   : > { %v4097_v44 = vunpack.i.h.bf16 %v4444_v41  ;;  %v4096_v45 = vunpack.i.l.bf16 %v4444_v41  ;;  %v4100_v46 = vpop.permute.xlu1 %4099 }
  0x90   : > { %v4102_v47 = vunpack.i.h.bf16 %v4100_v46  ;;  %v4101_v48 = vunpack.i.l.bf16 %v4100_v46  ;;  %3719 = vmatprep.subr.bf16.mxu0 %v4446_v42 }
  0x91   : > { %3721 = vmatpush1.bf16.msra.mxu0 %v4448_v43  ;;  %v213_v50 = vsel %vm209_vm1, %v4096_v45, %v4097_v44 }
  0x92   : > { %v4105_v51 = vpop.permute.xlu0 %4104  ;;  %v3678_v52 = vpack.c.bf16 %v213_v50, %v211_v49  ;;  %v210_v53 = vsel %vm209_vm1, %v4101_v48, %v4091_v38  ;;  %v212_v54 = vsel %vm209_vm1, %v4102_v47, %v4096_v45  ;;  %v3688_v50 = vpack.c.bf16 %v4097_v44, %v4092_v34 }
  0x93   : > { %v4107_v55 = vunpack.i.h.bf16 %v4105_v51  ;;  %v4106_v56 = vunpack.i.l.bf16 %v4105_v51  ;;  %v4110_v57 = vpop.permute.xlu1 %4109  ;;  %v3680_v58 = vpack.c.bf16 %v212_v54, %v210_v53  ;;  %v4499_v53 = vld [vmem:[%s5528_s1 + $0x88] sm:$0xff] }
  0x94   : > { %v4112_v59 = vunpack.i.h.bf16 %v4110_v57  ;;  %v4111_v60 = vunpack.i.l.bf16 %v4110_v57  ;;  %3679 = vmatprep.subr.bf16.mxu1 %v3678_v52 }
  0x95   : > { %v764_v61 = vsel %vm758_vm0, %v4106_v56, %v4107_v55  ;;  %3681 = vmatpush1.bf16.msra.mxu1 %v3680_v58 }
  0x96   : > { %v4461_v62 = vpack.c.bf16 %v4112_v59, %v4107_v55  ;;  %v766_v63 = vsel %vm758_vm0, %v4111_v60, %v4112_v59  ;;  %v4115_v1 = vpop.permute.xlu0 %4114 }
  0x97   : > { %v4468_v6 = vpack.c.bf16 %v766_v63, %v764_v61  ;;  %v4117_v7 = vunpack.i.h.bf16 %v4115_v1  ;;  %v4116_v8 = vunpack.i.l.bf16 %v4115_v1  ;;  %v4120_v13 = vpop.permute.xlu1 %4119  ;;  %v4520_v1 = vld [vmem:[%s5528_s1 + $0x90] sm:$0xff] }
  0x98   : > { %v4122_v24 = vunpack.i.h.bf16 %v4120_v13  ;;  %v4121_v25 = vunpack.i.l.bf16 %v4120_v13  ;;  %v4527_v13 = vld [vmem:[%s5528_s1 + $0x48] sm:$0xff] }
  0x99   : > { %v763_v14 = vsel %vm758_vm0, %v4116_v8, %v4106_v56  ;;  %v765_v18 = vsel %vm758_vm0, %v4117_v7, %v4111_v60  ;;  %3724 = vmatprep.subr.msk.bf16.mxu0 %vm4464_vm4, %v4468_v6 }
  0x9a   : > { %v4475_v26 = vpack.c.bf16 %v765_v18, %v763_v14  ;;  %v4125_v27 = vpop.permute.xlu0 %4124  ;;  %v215_v36 = vsel %vm209_vm1, %v4121_v25, %v4122_v24 }
  0x9b   : > { %v4127_v28 = vunpack.i.h.bf16 %v4125_v27  ;;  %v4126_v29 = vunpack.i.l.bf16 %v4125_v27  ;;  %v4130_v30 = vpop.permute.xlu1 %4129 }
  0x9c   : > { %v4132_v31 = vunpack.i.h.bf16 %v4130_v30  ;;  %v4131_v32 = vunpack.i.l.bf16 %v4130_v30  ;;  %3727 = vmatpush1.bf16.msk.msra.mxu0 %vm4464_vm4, %v4475_v26 }
  0x9d   : > { %v217_v38 = vsel %vm209_vm1, %v4126_v29, %v4127_v28  ;;  %v3692_v60 = vpack.c.bf16 %v4127_v28, %v4122_v24 }
  0x9e   : > { %v3682_v39 = vpack.c.bf16 %v217_v38, %v215_v36  ;;  %v216_v40 = vsel %vm209_vm1, %v4132_v31, %v4126_v29  ;;  %v214_v41 = vsel %vm209_vm1, %v4131_v32, %v4121_v25  ;;  %v4135_v45 = vpop.permute.xlu0 %4134  ;;  %v4540_v31 = vld [vmem:[%s5528_s1 + $0x98] sm:$0xff]  ;;  %v4551_v38 = vld [vmem:[%s5528_s1 + $0x50] sm:$0xff] }
  0x9f   : > { %v3685_v46 = vpack.c.bf16 %v216_v40, %v214_v41  ;;  %v4137_v47 = vunpack.i.h.bf16 %v4135_v45  ;;  %v4136_v48 = vunpack.i.l.bf16 %v4135_v45  ;;  %v4140_v49 = vpop.permute.xlu1 %4139  ;;  %3209 = vmatmul.mubr.msk.f32.vlgmr.msra.gmra.mrb[0].mxu0 %vm227_vm5, %v4483_v35 }
  0xa0   : > { %v4142_v51 = vunpack.i.h.bf16 %v4140_v49  ;;  %v4141_v52 = vunpack.i.l.bf16 %v4140_v49  ;;  %3684 = vmatprep.subr.msk.bf16.mxu1 %vm4464_vm4, %v3682_v39  ;;  %876 = vmatprep.mubr.f32.mxu0 %v4323_v17 }
  0xa1   : > { %3687 = vmatpush1.bf16.msk.msra.mxu1 %vm4464_vm4, %v3685_v46  ;;  %v1083_v34 = vsel %vm1081_vm6, %v4136_v48, %v4137_v47 }
  0xa2   : > { %v4509_v44 = vpack.c.bf16 %v4142_v51, %v4137_v47  ;;  %v4145_v54 = vpop.permute.xlu0 %4144  ;;  %3689 = vmatprep.subr.bf16.mxu1 %v3688_v50  ;;  %v1085_v55 = vsel %vm1081_vm6, %v4141_v52, %v4142_v51 }
  0xa3   : > { %v4147_v56 = vunpack.i.h.bf16 %v4145_v54  ;;  %v4146_v57 = vunpack.i.l.bf16 %v4145_v54  ;;  %3210 = vmatmul.mubr.msk.f32.gmra.mrb[2].mxu0 %vm227_vm5, %v4499_v53  ;;  %v3738_v58 = vpack.c.bf16 %v1085_v55, %v1083_v34  ;;  %v4150_v59 = vpop.permute.xlu1 %4149 }
  0xa4   : > { %3163 = vmatmul.mubr.msk.f32.vlgmr.msra.gmra.mrb[0].mxu1 %vm227_vm5, %v4506_v33  ;;  %v4152_v61 = vunpack.i.h.bf16 %v4150_v59  ;;  %v4151_v63 = vunpack.i.l.bf16 %v4150_v59  ;;  %882 = vmatprep.mubr.f32.mxu0 %v4323_v17  ;;  %v4591_v59 = vld [vmem:[%s5528_s1 + $0xa8] sm:$0xff] }
  0xa5   : > { %v1082_v7 = vsel %vm1081_vm6, %v4146_v57, %v4136_v48  ;;  %v1084_v8 = vsel %vm1081_vm6, %v4147_v56, %v4141_v52  ;;  %3739 = vmatprep.subr.bf16.mxu0 %v3738_v58  ;;  %3691 = vmatpush3.bf16.msra.mxu1 %v3688_v50  ;;  %v4567_v50 = vld [vmem:[%s5528_s1 + $0xa0] sm:$0xff] }
  0xa6   : > { %v3740_v14 = vpack.c.bf16 %v1084_v8, %v1082_v7  ;;  %3694 = vmatprep.subr.msk.bf16.mxu1 %vm4464_vm4, %v3692_v60  ;;  %329 = vmatprep.mubr.f32.mxu1 %v4323_v17  ;;  %v4155_v18 = vpop.permute.xlu0 %4154  ;;  %v1087_v24 = vsel %vm1081_vm6, %v4151_v63, %v4152_v61 }
  0xa7   : > { %3211 = vmatmul.mubr.msk.f32.gmra.mrb[4].mxu0 %vm227_vm5, %v4520_v1  ;;  %v4157_v25 = vunpack.i.h.bf16 %v4155_v18  ;;  %v4156_v27 = vunpack.i.l.bf16 %v4155_v18  ;;  %v4160_v28 = vpop.permute.xlu1 %4159 }
  0xa8   : > { %3164 = vmatmul.mubr.msk.f32.gmra.mrb[2].mxu1 %vm227_vm5, %v4527_v13  ;;  %3741 = vmatpush1.bf16.msra.mxu0 %v3740_v14  ;;  %v4162_v29 = vunpack.i.h.bf16 %v4160_v28  ;;  %v4161_v30 = vunpack.i.l.bf16 %v4160_v28  ;;  %v4610_v28 = vld [vmem:[%s5528_s1 + $0xc0] sm:$0xff] }
  0xa9   : > { %v1089_v32 = vsel %vm1081_vm6, %v4156_v27, %v4157_v25  ;;  %v4543_v36 = vpack.c.bf16 %v4157_v25, %v4152_v61  ;;  %3697 = vmatpush3.bf16.msk.msra.mxu1 %vm4464_vm4, %v3692_v60  ;;  %888 = vmatprep.mubr.f32.mxu0 %v4323_v17 }
  0xaa   : > { %v3742_v39 = vpack.c.bf16 %v1089_v32, %v1087_v24  ;;  %v1088_v40 = vsel %vm1081_vm6, %v4162_v29, %v4156_v27  ;;  %v1086_v41 = vsel %vm1081_vm6, %v4161_v30, %v4151_v63  ;;  %335 = vmatprep.mubr.f32.mxu1 %v4323_v17  ;;  %v4165_v45 = vpop.permute.xlu0 %4164  ;;  %3699 = vmatprep.subr.bf16.mxu1 %v3698_v19  ;;  %v4597_v63 = vld [vmem:[%s5528_s1 + $0x60] sm:$0xff] }
  0xab   : > { %v3745_v46 = vpack.c.bf16 %v1088_v40, %v1086_v41  ;;  %3212 = vmatmul.mubr.msk.f32.gmra.mrb[6].mxu0 %vm227_vm5, %v4540_v31  ;;  %v4167_v47 = vunpack.i.h.bf16 %v4165_v45  ;;  %v4166_v48 = vunpack.i.l.bf16 %v4165_v45  ;;  %v4170_v49 = vpop.permute.xlu1 %4169 }
  0xac   : > { %3165 = vmatmul.mubr.msk.f32.gmra.mrb[4].mxu1 %vm227_vm5, %v4551_v38  ;;  %894 = vmatprep.mubr.f32.mxu0 %v4323_v17  ;;  %v4172_v51 = vunpack.i.h.bf16 %v4170_v49  ;;  %v4171_v0 = vunpack.i.l.bf16 %v4170_v49 }
  0xad   : > { %341 = vmatprep.mubr.f32.mxu1 %v4323_v17  ;;  %3744 = vmatprep.subr.msk.bf16.mxu0 %vm4464_vm4, %v3742_v39  ;;  %v1406_v19 = vsel %vm1404_vm7, %v4166_v48, %v4167_v47  ;;  %v4616_v39 = vld [vmem:[%s5528_s1 + $0x68] sm:$0xff] }
  0xae   : > { %3747 = vmatpush1.bf16.msk.msra.mxu0 %vm4464_vm4, %v3745_v46  ;;  %v4580_v52 = vpack.c.bf16 %v4172_v51, %v4167_v47  ;;  %v4175_v34 = vpop.permute.xlu0 %4174  ;;  %v1408_v54 = vsel %vm1404_vm7, %v4171_v0, %v4172_v51 }
  0xaf   : > { %3213 = vmatmul.mubr.msk.f32.gmra.mrb[8].mxu0 %vm227_vm5, %v4567_v50  ;;  %v4177_v55 = vunpack.i.h.bf16 %v4175_v34  ;;  %v4176_v56 = vunpack.i.l.bf16 %v4175_v34  ;;  %v3758_v57 = vpack.c.bf16 %v1408_v54, %v1406_v19  ;;  %v4180_v58 = vpop.permute.xlu1 %4179  ;;  %v4637_v19 = vld [vmem:[%s5528_s1 + $0xc8] sm:$0xff] }
  0xb0   : > { %3166 = vmatmul.mubr.msk.f32.gmra.mrb[6].mxu1 %vm227_vm5, %v4575_v5  ;;  %900 = vmatprep.mubr.f32.mxu0 %v4323_v17  ;;  %v4182_v60 = vunpack.i.h.bf16 %v4180_v58  ;;  %v4181_v61 = vunpack.i.l.bf16 %v4180_v58 }
  0xb1   : > { %347 = vmatprep.mubr.f32.mxu1 %v4323_v17  ;;  %3759 = vmatprep.subr.bf16.mxu0 %v3758_v57  ;;  %v1405_v7 = vsel %vm1404_vm7, %v4176_v56, %v4166_v48  ;;  %v1407_v8 = vsel %vm1404_vm7, %v4177_v55, %v4171_v0  ;;  %v3159_v55 = vld [vmem:[%s5528_s1 + $0x70] sm:$0xff] }
  0xb2   : > { %v4185_v14 = vpop.permute.xlu0 %4184  ;;  %v1410_v18 = vsel %vm1404_vm7, %v4181_v61, %v4182_v60  ;;  %v3760_v32 = vpack.c.bf16 %v1407_v8, %v1405_v7 }
  0xb3   : > { %3214 = vmatmul.mubr.msk.f32.gmra.mrb[10].mxu0 %vm227_vm5, %v4591_v59  ;;  %v4187_v24 = vunpack.i.h.bf16 %v4185_v14  ;;  %v4186_v25 = vunpack.i.l.bf16 %v4185_v14  ;;  %v4190_v27 = vpop.permute.xlu1 %4189  ;;  %v4666_v14 = vld [vmem:[%s5528_s1 + $0xd0] sm:$0xff] }
  0xb4   : > { %3167 = vmatmul.mubr.msk.f32.gmra.mrb[8].mxu1 %vm227_vm5, %v4597_v63  ;;  %1193 = vmatprep.mubr.f32.mxu0 %v4323_v17  ;;  %v4192_v29 = vunpack.i.h.bf16 %v4190_v27  ;;  %v4191_v30 = vunpack.i.l.bf16 %v4190_v27 }
  0xb5   : > { %353 = vmatprep.mubr.f32.mxu1 %v4323_v17  ;;  %v1412_v40 = vsel %vm1404_vm7, %v4186_v25, %v4187_v24  ;;  %v4619_v41 = vpack.c.bf16 %v4187_v24, %v4182_v60 }
  0xb6   : > { %v3762_v45 = vpack.c.bf16 %v1412_v40, %v1410_v18  ;;  %v1411_v46 = vsel %vm1404_vm7, %v4192_v29, %v4186_v25  ;;  %v1409_v47 = vsel %vm1404_vm7, %v4191_v30, %v4181_v61  ;;  %v4623_v48 = vpop.permute.xlu0 %4194  ;;  %v3160_v18 = vld [vmem:[%s5528_s1 + $0x78] sm:$0x3f] }
  0xb7   : > { %3236 = vmatmul.mubr.msk.f32.vlgmr.msra.gmra.mrb[0].mxu0 %vm227_vm5, %v4610_v28  ;;  %v4197_v49 = vunpack.i.h.bf16 %v4623_v48  ;;  %v4196_v51 = vunpack.i.l.bf16 %v4623_v48  ;;  %v4629_v0 = vpop.permute.xlu1 %4199  ;;  %v3765_v56 = vpack.c.bf16 %v1411_v46, %v1409_v47  ;;  %v4687_v30 = vld [vmem:[%s5528_s1 + $0xd8] sm:$0xff] }
  0xb8   : > { %3168 = vmatmul.mubr.msk.f32.gmra.mrb[10].mxu1 %vm227_vm5, %v4616_v39  ;;  %1199 = vmatprep.mubr.f32.mxu0 %v4323_v17  ;;  %v4202_v34 = vunpack.i.h.bf16 %v4629_v0  ;;  %v4201_v54 = vunpack.i.l.bf16 %v4629_v0 }
  0xb9   : > { %359 = vmatprep.mubr.f32.mxu1 %v4323_v17  ;;  %3761 = vmatpush1.bf16.msra.mxu0 %v3760_v32  ;;  %v1729_v57 = vsel %vm1727_vm8, %v4196_v51, %v4197_v49 }
  0xba   : > { %3764 = vmatprep.subr.msk.bf16.mxu0 %vm4464_vm4, %v3762_v45  ;;  %v4650_v58 = vpack.c.bf16 %v4202_v34, %v4197_v49  ;;  %v4652_v60 = vpop.permute.xlu0 %4204  ;;  %v1731_v61 = vsel %vm1727_vm8, %v4201_v54, %v4202_v34  ;;  %v4788_v34 = vld [vmem:[%s5528_s1 + $0xf8] sm:$0x3f] }
  0xbb   : > { %3237 = vmatmul.mubr.msk.f32.gmra.mrb[2].mxu0 %vm227_vm5, %v4637_v19  ;;  %v3778_v7 = vpack.c.bf16 %v1731_v61, %v1729_v57  ;;  %v4659_v8 = vpop.permute.xlu1 %4209  ;;  %v3712_v61 = vpack.c.bf16 %v4390_v12, %v4386_v10  ;;  %v4823_v12 = vld [vmem:[%s5528_s1 + $0x100] sm:$0xff] }
  0xbc   : > { %3169 = vmatmul.mubr.msk.f32.gmra.mrb[12].mxu1 %vm227_vm5, %v3159_v55  ;;  %1205 = vmatprep.mubr.f32.mxu0 %v4323_v17  ;;  %v4212_v24 = vunpack.i.h.bf16 %v4659_v8 }
  0xbd   : > { %365 = vmatprep.mubr.f32.mxu1 %v4323_v17  ;;  %3767 = vmatpush1.bf16.msk.msra.mxu0 %vm4464_vm4, %v3765_v56 }
  0xbe   : > { %3779 = vmatprep.subr.bf16.mxu0 %v3778_v7  ;;  %v4675_v25 = vpop.permute.xlu0 %4214 }
  0xbf   : > { %3238 = vmatmul.mubr.msk.f32.gmra.mrb[4].mxu0 %vm227_vm5, %v4666_v14  ;;  %v4217_v27 = vunpack.i.h.bf16 %v4675_v25  ;;  %v4680_v29 = vpop.permute.xlu1 %4219  ;;  %v4216_v56 = vunpack.i.l.bf16 %v4675_v25 }
  0xc0   : > { %3170 = vmatmul.mubr.msk.f32.gmra.mrb[14].mxu1 %vm227_vm5, %v3160_v18  ;;  %1211 = vmatprep.mubr.f32.mxu0 %v4323_v17  ;;  %v4221_v10 = vunpack.i.l.bf16 %v4680_v29 }
  0xc1   : > { %3506 = vmatprep.mubr.msk.f32.mxu1 %vm227_vm5, %v4506_v33  ;;  %v4695_v32 = vpack.c.bf16 %v4217_v27, %v4212_v24  ;;  %v4710_v33 = vld [vmem:[%s5528_s1 + $0xe0] sm:$0xff] }
  0xc2   : > { %v4697_v40 = vpop.permute.xlu0 %4224 }
  0xc3   : > { %3239 = vmatmul.mubr.msk.f32.gmra.mrb[6].mxu0 %vm227_vm5, %v4687_v30  ;;  %v4227_v45 = vunpack.i.h.bf16 %v4697_v40  ;;  %v4702_v46 = vpop.permute.xlu1 %4229  ;;  %v4226_v0 = vunpack.i.l.bf16 %v4697_v40 }
  0xc4   : > { %3507 = vmatmul.mubr.msk.f32.vlgmr.msra.gmra.mrb[16].mxu1 %vm227_vm5, %v4527_v13  ;;  %1217 = vmatprep.mubr.f32.mxu0 %v4323_v17  ;;  %v4232_v47 = vunpack.i.h.bf16 %v4702_v46 }
  0xc5   : > { %3509 = vmatprep.mubr.msk.f32.mxu1 %vm227_vm5, %v4551_v38  ;;  %3701 = vmatpush1.bf16.msra.mxu1 %v3700_v20 }
  0xc6   : > { %3704 = vmatprep.subr.msk.bf16.mxu1 %vm4464_vm4, %v3702_v21  ;;  %v4727_v13 = vpack.c.bf16 %v4232_v47, %v4227_v45  ;;  %v4729_v49 = vpop.permute.xlu0 %4234 }
  0xc7   : > { %3240 = vmatmul.mubr.msk.f32.gmra.mrb[8].mxu0 %vm227_vm5, %v4710_v33  ;;  %v4733_v38 = vpop.permute.xlu1 %4239 }
  0xc8   : > { %3510 = vmatmul.mubr.msk.f32.gmra.mrb[18].mxu1 %vm227_vm5, %v4575_v5  ;;  %1223 = vmatprep.mubr.f32.mxu0 %v4323_v17  ;;  %v5531_v4 = vunpack.i.h.bf16 %v4733_v38  ;;  %v4206_v5 = vunpack.i.l.bf16 %v4652_v60  ;;  %v5535_v40 = vunpack.i.h.bf16 %v4733_v38 }
  0xc9   : > { %3512 = vmatprep.mubr.msk.f32.mxu1 %vm227_vm5, %v4597_v63  ;;  %3707 = vmatpush1.bf16.msk.msra.mxu1 %vm4464_vm4, %v3705_v22  ;;  %v4207_v22 = vunpack.i.h.bf16 %v4652_v60  ;;  %v4797_v60 = vld [vmem:[%s5528_s1] sm:$0xff] }
  0xca   : > { %3709 = vmatprep.subr.bf16.mxu1 %v4425_v23  ;;  %v4752_v9 = vpop.permute.xlu0 %4244 }
  0xcb   : > { %3241 = vmatmul.mubr.msk.f32.gmra.mrb[10].mxu0 %vm227_vm5, %v4741_v2  ;;  %v5530_v11 = vunpack.i.h.bf16 %v4752_v9  ;;  %v4757_v20 = vpop.permute.xlu1 %4249 }
  0xcc   : > { %3513 = vmatmul.mubr.msk.f32.gmra.mrb[20].mxu1 %vm227_vm5, %v4616_v39  ;;  %1229 = vmatprep.mubr.f32.mxu0 %v4323_v17 }
  0xcd   : > { %3515 = vmatprep.mubr.msk.f32.mxu1 %vm227_vm5, %v3159_v55  ;;  %v4772_v16 = vpack.c.bf16 %v5530_v11, %v5531_v4  ;;  %v4211_v55 = vunpack.i.l.bf16 %v4659_v8  ;;  %v1730_v11 = vsel %vm1727_vm8, %v4207_v22, %v4201_v54  ;;  %v4222_v4 = vunpack.i.h.bf16 %v4680_v29  ;;  %v4838_v29 = vld [vmem:[%s5528_s1 + $0x8] sm:$0xff]  ;;  %v158_v22 = vld [vmem:[%s5528_s1 + $0x10] sm:$0xff] }
  0xce   : > { %v4774_v21 = vpop.permute.xlu0 %4254  ;;  %v4231_v54 = vunpack.i.l.bf16 %v4702_v46 }
  0xcf   : > { %3242 = vmatmul.mubr.msk.f32.gmra.mrb[12].mxu0 %vm227_vm5, %v4765_v15  ;;  %v4257_v63 = vunpack.i.h.bf16 %v4774_v21  ;;  %v4781_v39 = vpop.permute.xlu1 %4259  ;;  %v1733_v48 = vsel %vm1727_vm8, %v4211_v55, %v4212_v24  ;;  %v1734_v25 = vsel %vm1727_vm8, %v4222_v4, %v4216_v56 }
  0xd0   : > { %3516 = vmatmul.mubr.msk.f32.gmra.mrb[22].mxu1 %vm227_vm5, %v3160_v18  ;;  %1235 = vmatprep.mubr.f32.mxu0 %v4323_v17  ;;  %v5532_v57 = vunpack.i.h.bf16 %v4781_v39  ;;  %v1728_v18 = vsel %vm1727_vm8, %v4206_v5, %v4196_v51  ;;  %v1735_v51 = vsel %vm1727_vm8, %v4216_v56, %v4217_v27  ;;  %v4852_v27 = vld [vmem:[%s5528_s1 + $0x108] sm:$0xff]  ;;  %v2054_v4 = vsel %vm2050_vm9, %v4231_v54, %v4232_v47  ;;  %v4880_v47 = vld [vmem:[%s5528_s1 + $0x110] sm:$0xff]  ;;  %v160_v56 = vld [vmem:[%s5528_s1 + $0x20] sm:$0xff] }
  0xd1   : > { %571 = vmatprep.mubr.f32.mxu1 %v4323_v17  ;;  %v3780_v8 = vpack.c.bf16 %v1730_v11, %v1728_v18  ;;  %v3782_v24 = vpack.c.bf16 %v1735_v51, %v1733_v48  ;;  %v2052_v11 = vsel %vm2050_vm9, %v4226_v0, %v4227_v45  ;;  %v161_v18 = vld [vmem:[%s5528_s1 + $0x28] sm:$0xff]  ;;  %v162_v48 = vld [vmem:[%s5528_s1 + $0x30] sm:$0xff] }
  0xd2   : > { %v4805_v7 = vpack.c.bf16 %v5532_v57, %v4257_v63  ;;  %v3798_v45 = vpack.c.bf16 %v2054_v4, %v2052_v11  ;;  %v4934_v51 = vld [vmem:[%s5528_s1 + $0x130] sm:$0xff]  ;;  %v4241_v11 = vunpack.i.l.bf16 %v4733_v38  ;;  %v4246_v4 = vunpack.i.l.bf16 %v4752_v9 }
  0xd3   : > { %3243 = vmatmul.mubr.msk.f32.gmra.mrb[14].mxu0 %vm227_vm5, %v4788_v34  ;;  %v4251_v57 = vunpack.i.l.bf16 %v4757_v20 }
  0xd4   : > { %3182 = vmatmul.mubr.msk.f32.vlgmr.msra.gmra.mrb[0].mxu1 %vm227_vm5, %v4797_v60  ;;  %1516 = vmatprep.mubr.f32.mxu0 %v4323_v17  ;;  %v2056_v46 = vsel %vm2050_vm9, %v4241_v11, %v5535_v40 }
  0xd5   : > { %3711 = vmatpush3.bf16.msra.mxu1 %v4425_v23  ;;  %577 = vmatprep.mubr.f32.mxu1 %v4323_v17  ;;  %v1732_v23 = vsel %vm1727_vm8, %v4221_v10, %v4211_v55  ;;  %v4895_v55 = vld [vmem:[%s5528_s1 + $0x118] sm:$0xff]  ;;  %v4921_v10 = vld [vmem:[%s5528_s1 + $0x128] sm:$0xff] }
  0xd6   : > { %3714 = vmatprep.subr.msk.bf16.mxu1 %vm4464_vm4, %v3712_v61  ;;  %v3785_v5 = vpack.c.bf16 %v1734_v25, %v1732_v23  ;;  %v4236_v25 = vunpack.i.l.bf16 %v4729_v49  ;;  %v4949_v23 = vld [vmem:[%s5528_s1 + $0x138] sm:$0x3f] }
  0xd7   : > { %3263 = vmatmul.mubr.msk.f32.vlgmr.msra.gmra.mrb[0].mxu0 %vm227_vm5, %v4823_v12 }
  0xd8   : > { %3183 = vmatmul.mubr.msk.f32.gmra.mrb[2].mxu1 %vm227_vm5, %v4838_v29  ;;  %1522 = vmatprep.mubr.f32.mxu0 %v4323_v17 }
  0xd9   : > { %3717 = vmatpush3.bf16.msk.msra.mxu1 %vm4464_vm4, %v3712_v61  ;;  %583 = vmatprep.mubr.f32.mxu1 %v4323_v17  ;;  %v4908_v61 = vld [vmem:[%s5528_s1 + $0x120] sm:$0xff] }
  0xda   : > { %3858 = vmatprep.subr.bf16.mxu1 %v4446_v42  ;;  %3781 = vmatpush1.bf16.msra.mxu0 %v3780_v8  ;;  %v159_v42 = vld [vmem:[%s5528_s1 + $0x18] sm:$0xff] }
  0xdb   : > { %3264 = vmatmul.mubr.msk.f32.gmra.mrb[2].mxu0 %vm227_vm5, %v4852_v27  ;;  %3784 = vmatprep.subr.msk.bf16.mxu0 %vm4464_vm4, %v3782_v24  ;;  %v163_v8 = vld [vmem:[%s5528_s1 + $0x38] sm:$0x3f]  ;;  %v4237_v24 = vunpack.i.h.bf16 %v4729_v49  ;;  %v2051_v49 = vsel %vm2050_vm9, %v4236_v25, %v4226_v0  ;;  %v5536_v0 = vunpack.i.h.bf16 %v4752_v9  ;;  %v2055_v25 = vsel %vm2050_vm9, %v4251_v57, %v4241_v11  ;;  %v4265_v11 = vpop.permute.xlu0 %4264 }
  0xdc   : > { %3184 = vmatmul.mubr.msk.f32.gmra.mrb[4].mxu1 %vm227_vm5, %v158_v22  ;;  %1528 = vmatprep.mubr.f32.mxu0 %v4323_v17 }
  0xdd   : > { %589 = vmatprep.mubr.f32.mxu1 %v4323_v17 }
  0xde   : > { %3787 = vmatpush1.bf16.msk.msra.mxu0 %vm4464_vm4, %v3785_v5  ;;  %v2053_v5 = vsel %vm2050_vm9, %v4237_v24, %v4231_v54  ;;  %v2058_v54 = vsel %vm2050_vm9, %v4246_v4, %v5536_v0  ;;  %v4261_v24 = vunpack.i.l.bf16 %v4781_v39 }
  0xdf   : > { %3265 = vmatmul.mubr.msk.f32.gmra.mrb[4].mxu0 %vm227_vm5, %v4880_v47  ;;  %3799 = vmatprep.subr.bf16.mxu0 %v3798_v45  ;;  %v4252_v45 = vunpack.i.h.bf16 %v4757_v20  ;;  %v4256_v20 = vunpack.i.l.bf16 %v4774_v21  ;;  %v3800_v38 = vpack.c.bf16 %v2053_v5, %v2051_v49  ;;  %v3802_v9 = vpack.c.bf16 %v2058_v54, %v2056_v46  ;;  %v5081_v49 = vld [vmem:[%s5528_s1 + $0x170] sm:$0xff] }
  0xe0   : > { %3185 = vmatmul.mubr.msk.f32.gmra.mrb[6].mxu1 %vm227_vm5, %v159_v42  ;;  %1534 = vmatprep.mubr.f32.mxu0 %v4323_v17 }
  0xe1   : > { %595 = vmatprep.mubr.f32.mxu1 %v4323_v17 }
  0xe3   : > { %3266 = vmatmul.mubr.msk.f32.gmra.mrb[6].mxu0 %vm227_vm5, %v4895_v55 }
  0xe4   : > { %3186 = vmatmul.mubr.msk.f32.gmra.mrb[8].mxu1 %vm227_vm5, %v160_v56  ;;  %1540 = vmatprep.mubr.f32.mxu0 %v4323_v17 }
  0xe5   : > { %601 = vmatprep.mubr.f32.mxu1 %v4323_v17 }
  0xe7   : > { %3267 = vmatmul.mubr.msk.f32.gmra.mrb[8].mxu0 %vm227_vm5, %v4908_v61 }
  0xe8   : > { %3187 = vmatmul.mubr.msk.f32.gmra.mrb[10].mxu1 %vm227_vm5, %v161_v18  ;;  %1546 = vmatprep.mubr.f32.mxu0 %v4323_v17 }
  0xe9   : > { %607 = vmatprep.mubr.f32.mxu1 %v4323_v17 }
  0xeb   : > { %3268 = vmatmul.mubr.msk.f32.gmra.mrb[10].mxu0 %vm227_vm5, %v4921_v10 }
  0xec   : > { %3188 = vmatmul.mubr.msk.f32.gmra.mrb[12].mxu1 %vm227_vm5, %v162_v48  ;;  %1552 = vmatprep.mubr.f32.mxu0 %v4323_v17 }
  0xed   : > { %613 = vmatprep.mubr.f32.mxu1 %v4323_v17 }
  0xef   : > { %3269 = vmatmul.mubr.msk.f32.gmra.mrb[12].mxu0 %vm227_vm5, %v4934_v51 }
  0xf0   : > { %3189 = vmatmul.mubr.msk.f32.gmra.mrb[14].mxu1 %vm227_vm5, %v163_v8  ;;  %1558 = vmatprep.mubr.f32.mxu0 %v4323_v17 }
  0xf1   : > { %3526 = vmatprep.mubr.msk.f32.mxu1 %vm227_vm5, %v4797_v60  ;;  %v4971_v60 = vld [vmem:[%s5528_s1 + $0x140] sm:$0xff] }
  0xf3   : > { %3270 = vmatmul.mubr.msk.f32.gmra.mrb[14].mxu0 %vm227_vm5, %v4949_v23 }
  0xf4   : > { %3527 = vmatmul.mubr.msk.f32.vlgmr.msra.gmra.mrb[16].mxu1 %vm227_vm5, %v4838_v29  ;;  %1839 = vmatprep.mubr.f32.mxu0 %v4323_v17  ;;  %v2057_v29 = vsel %vm2050_vm9, %v4252_v45, %v4246_v4  ;;  %v5070_v4 = vpop.permute.xlu1 %4269 }
  0xf5   : > { %3860 = vmatpush1.bf16.msra.mxu1 %v4448_v43  ;;  %3529 = vmatprep.mubr.msk.f32.mxu1 %vm227_vm5, %v158_v22  ;;  %v4995_v43 = vld [vmem:[%s5528_s1 + $0x148] sm:$0xff]  ;;  %v5537_v22 = vunpack.i.h.bf16 %v4781_v39  ;;  %v4272_v5 = vunpack.i.h.bf16 %v5070_v4  ;;  %v4271_v45 = vunpack.i.l.bf16 %v5070_v4  ;;  %v5135_v39 = vld [vmem:[%s5528_s1 + $0x180] sm:$0xff] }
  0xf6   : > { %3859 = vmatprep.subr.msk.bf16.mxu1 %vm4464_vm4, %v4468_v6  ;;  %v2375_v6 = vsel %vm2373_vm10, %v4256_v20, %v4257_v63 }
  0xf7   : > { %3290 = vmatmul.mubr.msk.f32.vlgmr.msra.gmra.mrb[0].mxu0 %vm227_vm5, %v4971_v60  ;;  %v2377_v57 = vsel %vm2373_vm10, %v4261_v24, %v5537_v22 }
  0xf8   : > { %3530 = vmatmul.mubr.msk.f32.gmra.mrb[18].mxu1 %vm227_vm5, %v159_v42  ;;  %1845 = vmatprep.mubr.f32.mxu0 %v4323_v17  ;;  %v3805_v42 = vpack.c.bf16 %v2057_v29, %v2055_v25  ;;  %v3818_v63 = vpack.c.bf16 %v2377_v57, %v2375_v6  ;;  %v4280_v46 = vpop.permute.xlu1 %4279 }
  0xf9   : > { %3861 = vmatpush1.bf16.msk.msra.mxu1 %vm4464_vm4, %v4475_v26  ;;  %3532 = vmatprep.mubr.msk.f32.mxu1 %vm227_vm5, %v160_v56  ;;  %v5021_v26 = vld [vmem:[%s5528_s1 + $0x150] sm:$0xff]  ;;  %v5033_v56 = vld [vmem:[%s5528_s1 + $0x158] sm:$0xff]  ;;  %v4282_v54 = vunpack.i.h.bf16 %v4280_v46 }
  0xfa   : > { %3729 = vmatprep.subr.bf16.mxu1 %v4439_v37  ;;  %3801 = vmatpush1.bf16.msra.mxu0 %v3800_v38  ;;  %v4281_v38 = vunpack.i.l.bf16 %v4280_v46 }
  0xfb   : > { %3291 = vmatmul.mubr.msk.f32.gmra.mrb[2].mxu0 %vm227_vm5, %v4995_v43  ;;  %3804 = vmatprep.subr.msk.bf16.mxu0 %vm4464_vm4, %v3802_v9 }
  0xfc   : > { %3533 = vmatmul.mubr.msk.f32.gmra.mrb[20].mxu1 %vm227_vm5, %v161_v18  ;;  %1851 = vmatprep.mubr.f32.mxu0 %v4323_v17  ;;  %v3205_v18 = vld [vmem:[%s5528_s1 + $0xb0] sm:$0xff]  ;;  %v2378_v57 = vsel %vm2373_vm10, %v4281_v38, %v4271_v45 }
  0xfd   : > { %3535 = vmatprep.mubr.msk.f32.mxu1 %vm227_vm5, %v162_v48  ;;  %v5046_v48 = vld [vmem:[%s5528_s1 + $0x160] sm:$0xff] }
  0xfe   : > { %3807 = vmatpush1.bf16.msk.msra.mxu0 %vm4464_vm4, %v3805_v42  ;;  %v5151_v42 = vld [vmem:[%s5528_s1 + $0x188] sm:$0xff] }
  0xff   : > { %3292 = vmatmul.mubr.msk.f32.gmra.mrb[4].mxu0 %vm227_vm5, %v5021_v26  ;;  %3819 = vmatprep.subr.bf16.mxu0 %v3818_v63 }
 0x100   : > { %3536 = vmatmul.mubr.msk.f32.gmra.mrb[22].mxu1 %vm227_vm5, %v163_v8  ;;  %1857 = vmatprep.mubr.f32.mxu0 %v4323_v17  ;;  %v3206_v8 = vld [vmem:[%s5528_s1 + $0xb8] sm:$0x3f] }
 0x101   : > { %906 = vmatprep.mubr.f32.mxu1 %v4323_v17 }
 0x103   : > { %3293 = vmatmul.mubr.msk.f32.gmra.mrb[6].mxu0 %vm227_vm5, %v5033_v56 }
 0x104   : > { %3215 = vmatmul.mubr.msk.f32.vlgmr.msra.gmra.mrb[12].mxu1 %vm227_vm5, %v3205_v18  ;;  %1863 = vmatprep.mubr.f32.mxu0 %v4323_v17 }
 0x105   : > { %3731 = vmatpush3.bf16.msra.mxu1 %v4439_v37  ;;  %912 = vmatprep.mubr.f32.mxu1 %v4323_v17  ;;  %v5063_v37 = vld [vmem:[%s5528_s1 + $0x168] sm:$0xff] }
 0x106   : > { %3734 = vmatprep.subr.msk.bf16.mxu1 %vm4464_vm4, %v4461_v62 }
 0x107   : > { %3294 = vmatmul.mubr.msk.f32.gmra.mrb[8].mxu0 %vm227_vm5, %v5046_v48 }
 0x108   : > { %3216 = vmatmul.mubr.msk.f32.gmra.mrb[14].mxu1 %vm227_vm5, %v3206_v8  ;;  %1869 = vmatprep.mubr.f32.mxu0 %v4323_v17 }
 0x109   : > { %3737 = vmatpush3.bf16.msk.msra.mxu1 %vm4464_vm4, %v4461_v62  ;;  %3546 = vmatprep.mubr.msk.f32.mxu1 %vm227_vm5, %v4483_v35  ;;  %v5083_v62 = vpop.permute.xlu0 %4274  ;;  %v4267_v35 = vunpack.i.h.bf16 %v4265_v11 }
 0x10a   : > { %3749 = vmatprep.subr.bf16.mxu1 %v4509_v44  ;;  %v4277_v40 = vunpack.i.h.bf16 %v5083_v62 }
 0x10b   : > { %3295 = vmatmul.mubr.msk.f32.gmra.mrb[10].mxu0 %vm227_vm5, %v5063_v37  ;;  %v2376_v0 = vsel %vm2373_vm10, %v4267_v35, %v4261_v24  ;;  %v5175_v35 = vld [vmem:[%s5528_s1 + $0x190] sm:$0xff] }
 0x10c   : > { %3547 = vmatmul.mubr.msk.f32.vlgmr.msra.gmra.mrb[16].mxu1 %vm227_vm5, %v4499_v53  ;;  %1875 = vmatprep.mubr.f32.mxu0 %v4323_v17  ;;  %v4266_v53 = vunpack.i.l.bf16 %v4265_v11 }
 0x10d   : > { %3751 = vmatpush3.bf16.msra.mxu1 %v4509_v44  ;;  %3549 = vmatprep.mubr.msk.f32.mxu1 %vm227_vm5, %v4520_v1  ;;  %v4276_v44 = vunpack.i.l.bf16 %v5083_v62  ;;  %v5103_v1 = vld [vmem:[%s5528_s1 + $0x178] sm:$0x3f]  ;;  %v5125_v21 = vpop.permute.xlu0 %4284 }
 0x10e   : > { %3754 = vmatprep.subr.msk.bf16.mxu1 %vm4464_vm4, %v4543_v36  ;;  %v4287_v24 = vunpack.i.h.bf16 %v5125_v21  ;;  %v4286_v9 = vunpack.i.l.bf16 %v5125_v21  ;;  %v3364_v62 = vld [vmem:[%s5528_s1 + $0x218] sm:$0xff] }
 0x10f   : > { %3296 = vmatmul.mubr.msk.f32.gmra.mrb[12].mxu0 %vm227_vm5, %v5081_v49  ;;  %v2380_v22 = vsel %vm2373_vm10, %v4282_v54, %v4276_v44 }
 0x110   : > { %3550 = vmatmul.mubr.msk.f32.gmra.mrb[18].mxu1 %vm227_vm5, %v4540_v31  ;;  %1881 = vmatprep.mubr.f32.mxu0 %v4323_v17  ;;  %v2374_v31 = vsel %vm2373_vm10, %v4266_v53, %v4256_v20  ;;  %v5127_v20 = vpop.permute.xlu1 %4289  ;;  %v2698_v63 = vsel %vm2696_vm11, %v4286_v9, %v4287_v24 }
 0x111   : > { %3757 = vmatpush3.bf16.msk.msra.mxu1 %vm4464_vm4, %v4543_v36  ;;  %3552 = vmatprep.mubr.msk.f32.mxu1 %vm227_vm5, %v4567_v50  ;;  %v2379_v36 = vsel %vm2373_vm10, %v4271_v45, %v4272_v5  ;;  %v2381_v50 = vsel %vm2373_vm10, %v4276_v44, %v4277_v40  ;;  %v4292_v29 = vunpack.i.h.bf16 %v5127_v20  ;;  %v4291_v25 = vunpack.i.l.bf16 %v5127_v20 }
 0x112   : > { %3769 = vmatprep.subr.bf16.mxu1 %v4580_v52  ;;  %v3820_v6 = vpack.c.bf16 %v2376_v0, %v2374_v31  ;;  %v5285_v31 = vld [vmem:[%s5528_s1 + $0x1c0] sm:$0xff] }
 0x113   : > { %3297 = vmatmul.mubr.msk.f32.gmra.mrb[14].mxu0 %vm227_vm5, %v5103_v1 }
 0x114   : > { %3553 = vmatmul.mubr.msk.f32.gmra.mrb[20].mxu1 %vm227_vm5, %v4591_v59  ;;  %2162 = vmatprep.mubr.f32.mxu0 %v4323_v17  ;;  %v3822_v59 = vpack.c.bf16 %v2381_v50, %v2379_v36 }
 0x115   : > { %3555 = vmatprep.mubr.msk.f32.mxu1 %vm227_vm5, %v3205_v18  ;;  %v2700_v18 = vsel %vm2696_vm11, %v4291_v25, %v4292_v29 }
 0x116   : > { %v3838_v11 = vpack.c.bf16 %v2700_v18, %v2698_v63 }
 0x117   : > { %3317 = vmatmul.mubr.msk.f32.vlgmr.msra.gmra.mrb[0].mxu0 %vm227_vm5, %v5135_v39 }
 0x118   : > { %3556 = vmatmul.mubr.msk.f32.gmra.mrb[22].mxu1 %vm227_vm5, %v3206_v8  ;;  %2168 = vmatprep.mubr.f32.mxu0 %v4323_v17  ;;  %v3825_v8 = vpack.c.bf16 %v2380_v22, %v2378_v57 }
 0x119   : > { %3566 = vmatprep.mubr.msk.f32.mxu1 %vm227_vm5, %v4610_v28  ;;  %3821 = vmatpush1.bf16.msra.mxu0 %v3820_v6  ;;  %v5209_v28 = vld [vmem:[%s5528_s1 + $0x1a0] sm:$0xff] }
 0x11a   : > { %3824 = vmatprep.subr.msk.bf16.mxu0 %vm4464_vm4, %v3822_v59 }
 0x11b   : > { %3318 = vmatmul.mubr.msk.f32.gmra.mrb[2].mxu0 %vm227_vm5, %v5151_v42 }
 0x11c   : > { %3567 = vmatmul.mubr.msk.f32.vlgmr.msra.gmra.mrb[16].mxu1 %vm227_vm5, %v4637_v19  ;;  %2174 = vmatprep.mubr.f32.mxu0 %v4323_v17  ;;  %v5221_v19 = vld [vmem:[%s5528_s1 + $0x1a8] sm:$0xff] }
 0x11d   : > { %3771 = vmatpush3.bf16.msra.mxu1 %v4580_v52  ;;  %3569 = vmatprep.mubr.msk.f32.mxu1 %vm227_vm5, %v4666_v14  ;;  %v5193_v52 = vld [vmem:[%s5528_s1 + $0x198] sm:$0xff]  ;;  %v5225_v14 = vpop.permute.xlu1 %4299 }
 0x11e   : > { %3774 = vmatprep.subr.msk.bf16.mxu1 %vm4464_vm4, %v4619_v41  ;;  %3827 = vmatpush1.bf16.msk.msra.mxu0 %vm4464_vm4, %v3825_v8 }
 0x11f   : > { %3319 = vmatmul.mubr.msk.f32.gmra.mrb[4].mxu0 %vm227_vm5, %v5175_v35  ;;  %3839 = vmatprep.subr.bf16.mxu0 %v3838_v11 }
 0x120   : > { %3570 = vmatmul.mubr.msk.f32.gmra.mrb[18].mxu1 %vm227_vm5, %v4687_v30  ;;  %2180 = vmatprep.mubr.f32.mxu0 %v4323_v17  ;;  %v5235_v30 = vld [vmem:[%s5528_s1 + $0x1b0] sm:$0xff] }
 0x121   : > { %3777 = vmatpush3.bf16.msk.msra.mxu1 %vm4464_vm4, %v4619_v41  ;;  %3572 = vmatprep.mubr.msk.f32.mxu1 %vm227_vm5, %v4710_v33  ;;  %v4295_v41 = vpop.permute.xlu0 %4294  ;;  %v4310_v53 = vpop.permute.xlu1 %4309 }
 0x122   : > { %3789 = vmatprep.subr.bf16.mxu1 %v4650_v58  ;;  %v4312_v44 = vunpack.i.h.bf16 %v4310_v53  ;;  %v4311_v46 = vunpack.i.l.bf16 %v4310_v53 }
 0x123   : > { %3320 = vmatmul.mubr.msk.f32.gmra.mrb[6].mxu0 %vm227_vm5, %v5193_v52 }
 0x124   : > { %3573 = vmatmul.mubr.msk.f32.gmra.mrb[20].mxu1 %vm227_vm5, %v4741_v2  ;;  %2186 = vmatprep.mubr.f32.mxu0 %v4323_v17  ;;  %v4297_v2 = vunpack.i.h.bf16 %v4295_v41 }
 0x125   : > { %3575 = vmatprep.mubr.msk.f32.mxu1 %vm227_vm5, %v4765_v15  ;;  %v5237_v33 = vpop.permute.xlu0 %4304  ;;  %v4296_v15 = vunpack.i.l.bf16 %v4295_v41 }
 0x126   : > { %v2699_v45 = vsel %vm2696_vm11, %v4297_v2, %v4291_v25 }
 0x127   : > { %3321 = vmatmul.mubr.msk.f32.gmra.mrb[8].mxu0 %vm227_vm5, %v5209_v28 }
 0x128   : > { %3576 = vmatmul.mubr.msk.f32.gmra.mrb[22].mxu1 %vm227_vm5, %v4788_v34  ;;  %2192 = vmatprep.mubr.f32.mxu0 %v4323_v17  ;;  %v4302_v34 = vunpack.i.h.bf16 %v5225_v14 }
 0x129   : > { %3586 = vmatprep.mubr.msk.f32.mxu1 %vm227_vm5, %v4823_v12  ;;  %v4301_v12 = vunpack.i.l.bf16 %v5225_v14 }
 0x12b   : > { %3322 = vmatmul.mubr.msk.f32.gmra.mrb[10].mxu0 %vm227_vm5, %v5221_v19  ;;  %v2701_v54 = vsel %vm2696_vm11, %v4311_v46, %v4301_v12 }
 0x12c   : > { %3587 = vmatmul.mubr.msk.f32.vlgmr.msra.gmra.mrb[16].mxu1 %vm227_vm5, %v4852_v27  ;;  %2198 = vmatprep.mubr.f32.mxu0 %v4323_v17  ;;  %v4307_v27 = vunpack.i.h.bf16 %v5237_v33 }
 0x12d   : > { %3791 = vmatpush3.bf16.msra.mxu1 %v4650_v58  ;;  %3589 = vmatprep.mubr.msk.f32.mxu1 %vm227_vm5, %v4880_v47  ;;  %v4306_v58 = vunpack.i.l.bf16 %v5237_v33  ;;  %v5257_v47 = vld [vmem:[%s5528_s1 + $0x1b8] sm:$0x3f] }
 0x12e   : > { %3794 = vmatprep.subr.msk.bf16.mxu1 %vm4464_vm4, %v4695_v32  ;;  %v3852_v4 = vpack.c.bf16 %v4307_v27, %v4302_v34 }
 0x12f   : > { %3323 = vmatmul.mubr.msk.f32.gmra.mrb[12].mxu0 %vm227_vm5, %v5235_v30  ;;  %v2703_v50 = vsel %vm2696_vm11, %v4312_v44, %v4306_v58 }
 0x130   : > { %3590 = vmatmul.mubr.msk.f32.gmra.mrb[18].mxu1 %vm227_vm5, %v4895_v55  ;;  %2204 = vmatprep.mubr.f32.mxu0 %v4323_v17  ;;  %v2697_v55 = vsel %vm2696_vm11, %v4296_v15, %v4286_v9 }
 0x131   : > { %3797 = vmatpush3.bf16.msk.msra.mxu1 %vm4464_vm4, %v4695_v32  ;;  %3592 = vmatprep.mubr.msk.f32.mxu1 %vm227_vm5, %v4908_v61  ;;  %v2702_v32 = vsel %vm2696_vm11, %v4301_v12, %v4302_v34  ;;  %v2704_v61 = vsel %vm2696_vm11, %v4306_v58, %v4307_v27  ;;  %v3840_v0 = vpack.c.bf16 %v2699_v45, %v2697_v55 }
 0x132   : > { %3809 = vmatprep.subr.bf16.mxu1 %v4727_v13  ;;  %v3842_v36 = vpack.c.bf16 %v2704_v61, %v2702_v32 }
 0x133   : > { %3324 = vmatmul.mubr.msk.f32.gmra.mrb[14].mxu0 %vm227_vm5, %v5257_v47 }
 0x134   : > { %3593 = vmatmul.mubr.msk.f32.gmra.mrb[20].mxu1 %vm227_vm5, %v4921_v10  ;;  %2485 = vmatprep.mubr.f32.mxu0 %v4323_v17  ;;  %v3335_v10 = vld [vmem:[%s5528_s1 + $0x1c8] sm:$0xff] }
 0x135   : > { %3595 = vmatprep.mubr.msk.f32.mxu1 %vm227_vm5, %v4934_v51  ;;  %v3845_v51 = vpack.c.bf16 %v2703_v50, %v2701_v54 }
 0x137   : > { %3344 = vmatmul.mubr.msk.f32.vlgmr.msra.gmra.mrb[0].mxu0 %vm227_vm5, %v5285_v31 }
 0x138   : > { %3596 = vmatmul.mubr.msk.f32.gmra.mrb[22].mxu1 %vm227_vm5, %v4949_v23  ;;  %2491 = vmatprep.mubr.f32.mxu0 %v4323_v17  ;;  %v3336_v23 = vld [vmem:[%s5528_s1 + $0x1d0] sm:$0xff] }
 0x139   : > { %3606 = vmatprep.mubr.msk.f32.mxu1 %vm227_vm5, %v4971_v60  ;;  %3841 = vmatpush1.bf16.msra.mxu0 %v3840_v0  ;;  %v3338_v60 = vld [vmem:[%s5528_s1 + $0x1e0] sm:$0xff] }
 0x13a   : > { %3844 = vmatprep.subr.msk.bf16.mxu0 %vm4464_vm4, %v3842_v36 }
 0x13b   : > { %3345 = vmatmul.mubr.msk.f32.gmra.mrb[2].mxu0 %vm227_vm5, %v3335_v10 }
 0x13c   : > { %3607 = vmatmul.mubr.msk.f32.vlgmr.msra.gmra.mrb[16].mxu1 %vm227_vm5, %v4995_v43  ;;  %2497 = vmatprep.mubr.f32.mxu0 %v4323_v17  ;;  %v3832_v43 = vpack.c.bf16 %v4277_v40, %v4272_v5  ;;  %v3365_v5 = vld [vmem:[%s5528_s1 + $0x220] sm:$0xff]  ;;  %v3367_v40 = vld [vmem:[%s5528_s1 + $0x230] sm:$0xff] }
 0x13d   : > { %3811 = vmatpush3.bf16.msra.mxu1 %v4727_v13  ;;  %3609 = vmatprep.mubr.msk.f32.mxu1 %vm227_vm5, %v5021_v26  ;;  %v3337_v13 = vld [vmem:[%s5528_s1 + $0x1d8] sm:$0xff]  ;;  %v3340_v26 = vld [vmem:[%s5528_s1 + $0x1f0] sm:$0xff] }
 0x13e   : > { %3814 = vmatprep.subr.msk.bf16.mxu1 %vm4464_vm4, %v4772_v16  ;;  %3847 = vmatpush1.bf16.msk.msra.mxu0 %vm4464_vm4, %v3845_v51 }
 0x13f   : > { %3346 = vmatmul.mubr.msk.f32.gmra.mrb[4].mxu0 %vm227_vm5, %v3336_v23 }
 0x140   : > { %3610 = vmatmul.mubr.msk.f32.gmra.mrb[18].mxu1 %vm227_vm5, %v5033_v56  ;;  %2503 = vmatprep.mubr.f32.mxu0 %v4323_v17  ;;  %v3848_v56 = vpack.c.bf16 %v4292_v29, %v4287_v24 }
 0x141   : > { %3817 = vmatpush3.bf16.msk.msra.mxu1 %vm4464_vm4, %v4772_v16  ;;  %3612 = vmatprep.mubr.msk.f32.mxu1 %vm227_vm5, %v5046_v48  ;;  %v3339_v16 = vld [vmem:[%s5528_s1 + $0x1e8] sm:$0xff]  ;;  %v3361_v48 = vld [vmem:[%s5528_s1 + $0x200] sm:$0xff] }
 0x142   : > { %3829 = vmatprep.subr.bf16.mxu1 %v4805_v7 }
 0x143   : > { %3347 = vmatmul.mubr.msk.f32.gmra.mrb[6].mxu0 %vm227_vm5, %v3337_v13 }
 0x144   : > { %3613 = vmatmul.mubr.msk.f32.gmra.mrb[20].mxu1 %vm227_vm5, %v5063_v37  ;;  %2509 = vmatprep.mubr.f32.mxu0 %v4323_v17  ;;  %v3362_v37 = vld [vmem:[%s5528_s1 + $0x208] sm:$0xff] }
 0x145   : > { %3615 = vmatprep.mubr.msk.f32.mxu1 %vm227_vm5, %v5081_v49  ;;  %v3363_v49 = vld [vmem:[%s5528_s1 + $0x210] sm:$0xff] }
 0x147   : > { %3348 = vmatmul.mubr.msk.f32.gmra.mrb[8].mxu0 %vm227_vm5, %v3338_v60 }
 0x148   : > { %3616 = vmatmul.mubr.msk.f32.gmra.mrb[22].mxu1 %vm227_vm5, %v5103_v1  ;;  %2515 = vmatprep.mubr.f32.mxu0 %v4323_v17  ;;  %v3368_v1 = vld [vmem:[%s5528_s1 + $0x238] sm:$0x3f] }
 0x149   : > { %3626 = vmatprep.mubr.msk.f32.mxu1 %vm227_vm5, %v5135_v39 }
 0x14b   : > { %3349 = vmatmul.mubr.msk.f32.gmra.mrb[10].mxu0 %vm227_vm5, %v3339_v16 }
 0x14c   : > { %3627 = vmatmul.mubr.msk.f32.vlgmr.msra.gmra.mrb[16].mxu1 %vm227_vm5, %v5151_v42  ;;  %2521 = vmatprep.mubr.f32.mxu0 %v4323_v17 }
 0x14d   : > { %3831 = vmatpush3.bf16.msra.mxu1 %v4805_v7  ;;  %3629 = vmatprep.mubr.msk.f32.mxu1 %vm227_vm5, %v5175_v35  ;;  %v3341_v7 = vld [vmem:[%s5528_s1 + $0x1f8] sm:$0x3f] }
 0x14e   : > { %3834 = vmatprep.subr.msk.bf16.mxu1 %vm4464_vm4, %v3832_v43 }
 0x14f   : > { %3350 = vmatmul.mubr.msk.f32.gmra.mrb[12].mxu0 %vm227_vm5, %v3340_v26 }
 0x150   : > { %3630 = vmatmul.mubr.msk.f32.gmra.mrb[18].mxu1 %vm227_vm5, %v5193_v52  ;;  %2527 = vmatprep.mubr.f32.mxu0 %v4323_v17 }
 0x151   : > { %3837 = vmatpush3.bf16.msk.msra.mxu1 %vm4464_vm4, %v3832_v43  ;;  %3632 = vmatprep.mubr.msk.f32.mxu1 %vm227_vm5, %v5209_v28 }
 0x152   : > { %3849 = vmatprep.subr.bf16.mxu1 %v3848_v56 }
 0x153   : > { %3351 = vmatmul.mubr.msk.f32.gmra.mrb[14].mxu0 %vm227_vm5, %v3341_v7 }
 0x154   : > { %3633 = vmatmul.mubr.msk.f32.gmra.mrb[20].mxu1 %vm227_vm5, %v5221_v19  ;;  %2808 = vmatprep.mubr.f32.mxu0 %v4323_v17 }
 0x155   : > { %3635 = vmatprep.mubr.msk.f32.mxu1 %vm227_vm5, %v5235_v30 }
 0x157   : > { %3371 = vmatmul.mubr.msk.f32.vlgmr.msra.gmra.mrb[0].mxu0 %vm227_vm5, %v3361_v48 }
 0x158   : > { %3636 = vmatmul.mubr.msk.f32.gmra.mrb[22].mxu1 %vm227_vm5, %v5257_v47  ;;  %2814 = vmatprep.mubr.f32.mxu0 %v4323_v17 }
 0x159   : > { %3646 = vmatprep.mubr.msk.f32.mxu1 %vm227_vm5, %v5285_v31 }
 0x15b   : > { %3372 = vmatmul.mubr.msk.f32.gmra.mrb[2].mxu0 %vm227_vm5, %v3362_v37 }
 0x15c   : > { %3647 = vmatmul.mubr.msk.f32.vlgmr.msra.gmra.mrb[16].mxu1 %vm227_vm5, %v3335_v10  ;;  %2820 = vmatprep.mubr.f32.mxu0 %v4323_v17 }
 0x15d   : > { %3851 = vmatpush3.bf16.msra.mxu1 %v3848_v56  ;;  %3649 = vmatprep.mubr.msk.f32.mxu1 %vm227_vm5, %v3336_v23 }
 0x15e   : > { %3854 = vmatprep.subr.msk.bf16.mxu1 %vm4464_vm4, %v3852_v4 }
 0x15f   : > { %3373 = vmatmul.mubr.msk.f32.gmra.mrb[4].mxu0 %vm227_vm5, %v3363_v49 }
 0x160   : > { %3650 = vmatmul.mubr.msk.f32.gmra.mrb[18].mxu1 %vm227_vm5, %v3337_v13  ;;  %2826 = vmatprep.mubr.f32.mxu0 %v4323_v17 }
 0x161   : > { %3857 = vmatpush3.bf16.msk.msra.mxu1 %vm4464_vm4, %v3852_v4  ;;  %3652 = vmatprep.mubr.msk.f32.mxu1 %vm227_vm5, %v3338_v60 }
 0x163   : > { %3374 = vmatmul.mubr.msk.f32.gmra.mrb[6].mxu0 %vm227_vm5, %v3364_v62 }
 0x164   : > { %3653 = vmatmul.mubr.msk.f32.gmra.mrb[20].mxu1 %vm227_vm5, %v3339_v16  ;;  %2832 = vmatprep.mubr.f32.mxu0 %v4323_v17 }
 0x165   : > { %3655 = vmatprep.mubr.msk.f32.mxu1 %vm227_vm5, %v3340_v26 }
 0x167   : > { %3375 = vmatmul.mubr.msk.f32.gmra.mrb[8].mxu0 %vm227_vm5, %v3365_v5 }
 0x168   : > { %3656 = vmatmul.mubr.msk.f32.gmra.mrb[22].mxu1 %vm227_vm5, %v3341_v7  ;;  %2838 = vmatprep.mubr.f32.mxu0 %v4323_v17 }
 0x169   : > { %3666 = vmatprep.mubr.msk.f32.mxu1 %vm227_vm5, %v3361_v48 }
 0x16b   : > { %3376 = vmatmul.mubr.msk.f32.gmra.mrb[10].mxu0 %vm227_vm5, %v3366_v3 }
 0x16c   : > { %3667 = vmatmul.mubr.msk.f32.vlgmr.msra.gmra.mrb[16].mxu1 %vm227_vm5, %v3362_v37  ;;  %2844 = vmatprep.mubr.f32.mxu0 %v4323_v17 }
 0x16d   : > { %3669 = vmatprep.mubr.msk.f32.mxu1 %vm227_vm5, %v3363_v49 }
 0x16f   : > { %3377 = vmatmul.mubr.msk.f32.gmra.mrb[12].mxu0 %vm227_vm5, %v3367_v40 }
 0x170   : > { %3670 = vmatmul.mubr.msk.f32.gmra.mrb[18].mxu1 %vm227_vm5, %v3364_v62  ;;  %2850 = vmatprep.mubr.f32.mxu0 %v4323_v17 }
 0x171   : > { %3672 = vmatprep.mubr.msk.f32.mxu1 %vm227_vm5, %v3365_v5 }
 0x173   : > { %3378 = vmatmul.mubr.msk.f32.gmra.mrb[14].mxu0 %vm227_vm5, %v3368_v1 }
 0x174   : > { %3673 = vmatmul.mubr.msk.f32.gmra.mrb[20].mxu1 %vm227_vm5, %v3366_v3 }
 0x175   : > { %3675 = vmatprep.mubr.msk.f32.mxu1 %vm227_vm5, %v3367_v40 }
 0x178   : > { %3676 = vmatmul.mubr.msk.f32.gmra.mrb[22].mxu1 %vm227_vm5, %v3368_v1 }
 0x1a7   : > { %v573_v38 = vpop.f32.mrb[0].mxu1 }
 0x1a8   : > { %v575_v21 = vpop.f32.mrb[1].mxu1 }
 0x1ab   : > { %v579_v20 = vpop.f32.mrb[2].mxu1 }
 0x1ac   : > { %v581_v39 = vpop.f32.mrb[3].mxu1 }
 0x1af   : > { %v585_v24 = vpop.f32.mrb[4].mxu1 }
 0x1b0   : > { %v587_v17 = vpop.f32.mrb[5].mxu1 }
 0x1b3   : > { %v591_v9 = vpop.f32.mrb[6].mxu1 }
 0x1b4   : > { %v593_v29 = vpop.f32.mrb[7].mxu1 }
 0x1b7   : > { %v597_v25 = vpop.f32.mrb[8].mxu1 }
 0x1b8   : > { %v599_v6 = vpop.f32.mrb[9].mxu1 }
 0x1bb   : > { %v603_v59 = vpop.f32.mrb[10].mxu1 }
 0x1bc   : > { %v605_v22 = vpop.f32.mrb[11].mxu1 }
 0x1d7   : > { %v908_v57 = vpop.f32.mrb[12].mxu1 }
 0x1d8   : > { %v910_v42 = vpop.f32.mrb[13].mxu1 }
 0x1db   : > { %v5452_v63 = vpop.f32.mrb[14].mxu1 }
 0x1dc   : > { %v5454_v18 = vpop.f32.mrb[15].mxu1 }
 0x22a   : > { %v2810_v8 = vpop.f32.mrb[0].mxu0 }
 0x22b   : > { %v3862_v11 = vadd.f32 %v2810_v8, %v573_v38  ;;  %v2812_v35 = vpop.f32.mrb[1].mxu0 }
 0x22c   : > { %v3863_v52 = vadd.f32 %v2812_v35, %v575_v21 }
 0x22d   : > { %v2986_v51 = vand.u32 2147483647, %v3862_v11 }
 0x22e   : > { %v2816_v28 = vpop.f32.mrb[2].mxu0  ;;  %v2987_v43 = vand.u32 2147483647, %v3863_v52 }
 0x22f   : > { %v3864_v41 = vadd.f32 %v2816_v28, %v579_v20  ;;  %v2818_v19 = vpop.f32.mrb[3].mxu0 }
 0x230   : > { %v3865_v14 = vadd.f32 %v2818_v19, %v581_v39 }
 0x231   : > { %v2989_v1 = vand.u32 2147483647, %v3864_v41 }
 0x232   : > { %v2822_v30 = vpop.f32.mrb[4].mxu0  ;;  %v2990_v39 = vand.u32 2147483647, %v3865_v14 }
 0x233   : > { %v5456_v33 = vadd.f32 %v2822_v30, %v585_v24  ;;  %v2824_v2 = vpop.f32.mrb[5].mxu0 }
 0x234   : > { %v5458_v15 = vadd.f32 %v2824_v2, %v587_v17 }
 0x236   : > { %v2828_v34 = vpop.f32.mrb[6].mxu0  ;;  %v2993_v52 = vand.u32 2147483647, %v5458_v15 }
 0x237   : > { %v5460_v12 = vadd.f32 %v2828_v34, %v591_v9  ;;  %v2830_v27 = vpop.f32.mrb[7].mxu0  ;;  %v2992_v9 = vand.u32 2147483647, %v5456_v33 }
 0x238   : > { %v5462_v58 = vadd.f32 %v2830_v27, %v593_v29 }
 0x239   : > { %v2995_v53 = vand.u32 2147483647, %v5460_v12 }
 0x23a   : > { %v2834_v47 = vpop.f32.mrb[8].mxu0  ;;  %v2996_v32 = vand.u32 2147483647, %v5462_v58 }
 0x23b   : > { %v3870_v55 = vadd.f32 %v2834_v47, %v597_v25  ;;  %v2836_v45 = vpop.f32.mrb[9].mxu0  ;;  %v3026_v0 = vrot.slane %v2995_v53, 7 }
 0x23c   : > { %v3871_v61 = vadd.f32 %v2836_v45, %v599_v6  ;;  %v3029_v23 = vrot.slane %v2996_v32, 7 }
 0x23d   : > { %v2998_v44 = vand.u32 2147483647, %v3870_v55 }
 0x23e   : > { %v2999_v46 = vand.u32 2147483647, %v3871_v61  ;;  %v2840_v31 = vpop.f32.mrb[10].mxu0 }
 0x23f   : > { %v3027_v36 = vrot.slane %v2998_v44, 7  ;;  %v3872_v50 = vadd.f32 %v2840_v31, %v603_v59  ;;  %v2842_v54 = vpop.f32.mrb[11].mxu0  ;;  %v5468_v10 = vpop.f32.mrb[16].mxu1 }
 0x240   : > { %v3030_v13 = vrot.slane %v2999_v46, 7  ;;  %v3873_v60 = vadd.f32 %v2842_v54, %v605_v22  ;;  %v5472_v16 = vpop.f32.mrb[17].mxu1  ;;  %v2991_v30 = vand.u32 2147483647, %v5468_v10 }
 0x241   : > { %v3028_v26 = vsel %vm3025_vm12, %v3026_v0, %v3027_v36  ;;  %v3001_v56 = vand.u32 2147483647, %v3872_v50  ;;  %v2988_v46 = vand.u32 2147483647, %v5472_v16 }
 0x242   : > { %v3065_v7 = vadd.f32 %v3028_v26, %v2986_v51  ;;  %v3031_v48 = vsel %vm3025_vm12, %v3029_v23, %v3030_v13  ;;  %v3002_v37 = vand.u32 2147483647, %v3873_v60  ;;  %v2846_v4 = vpop.f32.mrb[12].mxu0 }
 0x243   : > { %v3066_v49 = vadd.f32 %v3031_v48, %v2987_v43  ;;  %v3035_v62 = vrot.slane %v3001_v56, 7  ;;  %v3874_v5 = vadd.f32 %v2846_v4, %v908_v57  ;;  %v2848_v3 = vpop.f32.mrb[13].mxu0  ;;  %v5483_v40 = vpop.f32.mrb[18].mxu1 }
 0x244   : > { %3077 = vst [vmem:[%s5479_s19] sm:$0xff] %v3065_v7  ;;  %v3037_v38 = vrot.slane %v3002_v37, 7  ;;  %v3875_v21 = vadd.f32 %v2848_v3, %v910_v42  ;;  %v5486_v20 = vpop.f32.mrb[19].mxu1  ;;  %v2997_v42 = vand.u32 2147483647, %v5483_v40 }
 0x245   : > { %3078 = vst [vmem:[%s5479_s19 + $0x8] sm:$0xff] %v3066_v49  ;;  %v3036_v24 = vsel %vm3025_vm12, %v3027_v36, %v3035_v62  ;;  %v3004_v17 = vand.u32 2147483647, %v3874_v5  ;;  %v2994_v7 = vand.u32 2147483647, %v5486_v20 }
 0x246   : > { %v3068_v29 = vadd.f32 %v3036_v24, %v2989_v1  ;;  %v3038_v25 = vsel %vm3025_vm12, %v3030_v13, %v3037_v38  ;;  %v3005_v6 = vand.u32 2147483647, %v3875_v21  ;;  %v2852_v59 = vpop.f32.mrb[14].mxu0  ;;  %v3032_v45 = vrot.slane %v2997_v42, 7 }
 0x247   : > { %v3069_v22 = vadd.f32 %v3038_v25, %v2990_v39  ;;  %v3041_v57 = vrot.slane %v3004_v17, 7  ;;  %v3876_v8 = vadd.f32 %v2852_v59, %v5452_v63  ;;  %v2854_v11 = vpop.f32.mrb[15].mxu0  ;;  %v3674_v35 = vpop.f32.mrb[20].mxu1 }
 0x248   : > { %3081 = vst [vmem:[%s5479_s19 + $0x18] sm:$0xff] %v3068_v29  ;;  %v3043_v28 = vrot.slane %v3005_v6, 7  ;;  %v3877_v41 = vadd.f32 %v2854_v11, %v5454_v18  ;;  %v3003_v19 = vand.u32 2147483647, %v3674_v35  ;;  %v2943_v14 = vpop.f32.mrb[21].mxu1 }
 0x249   : > { %3082 = vst [vmem:[%s5479_s19 + $0x20] sm:$0xff] %v3069_v22  ;;  %v3042_v33 = vsel %vm3025_vm12, %v3035_v62, %v3041_v57  ;;  %v3007_v2 = vand.u32 2147483647, %v3876_v8  ;;  %v3000_v34 = vand.u32 2147483647, %v2943_v14 }
 0x24a   : > { %v3071_v63 = vadd.f32 %v3042_v33, %v2992_v9  ;;  %v3044_v27 = vsel %vm3025_vm12, %v3037_v38, %v3043_v28  ;;  %v3008_v47 = vand.u32 2147483647, %v3877_v41  ;;  %v3039_v15 = vrot.slane %v3003_v19, 7 }
 0x24b   : > { %v3072_v55 = vadd.f32 %v3044_v27, %v2993_v52  ;;  %v3047_v61 = vrot.slane %v3007_v2, 7  ;;  %v3033_v18 = vrot.slane %v3000_v34, 7  ;;  %v3677_v44 = vpop.f32.mrb[22].mxu1 }
 0x24c   : > { %3084 = vst [vmem:[%s5479_s19 + $0x30] sm:$0xff] %v3071_v63  ;;  %v3049_v31 = vrot.slane %v3008_v47, 7  ;;  %v3009_v0 = vand.u32 2147483647, %v3677_v44  ;;  %v2953_v36 = vpop.f32.mrb[23].mxu1 }
 0x24d   : > { %3085 = vst [vmem:[%s5479_s19 + $0x38] sm:$0xff] %v3072_v55  ;;  %v3048_v50 = vsel %vm3025_vm12, %v3041_v57, %v3047_v61  ;;  %v3034_v54 = vsel %vm3025_vm12, %v3032_v45, %v3033_v18  ;;  %v3040_v10 = vsel %vm3025_vm12, %v3033_v18, %v3039_v15  ;;  %v3006_v51 = vand.u32 2147483647, %v2953_v36 }
 0x24e   : > { %v3074_v23 = vadd.f32 %v3048_v50, %v2995_v53  ;;  %v3050_v13 = vsel %vm3025_vm12, %v3043_v28, %v3049_v31  ;;  %v3067_v60 = vadd.f32 %v3034_v54, %v2988_v46  ;;  %v3070_v16 = vadd.f32 %v3040_v10, %v2991_v30 }
 0x24f   : > { %v3075_v43 = vadd.f32 %v3050_v13, %v2996_v32  ;;  %v3051_v26 = vrot.slane %v3009_v0, 7  ;;  %v3045_v56 = vrot.slane %v3006_v51, 7 }
 0x250   : > { %3087 = vst [vmem:[%s5479_s19 + $0x48] sm:$0x7f] %v3074_v23  ;;  %3080 = vst.msk [vmem:[%s5479_s19 + $0x10] sm:$0xff] %vm3079_vm13, %v3067_v60 }
 0x251   : > { %3083 = vst.msk [vmem:[%s5479_s19 + $0x28] sm:$0xff] %vm3079_vm13, %v3070_v16  ;;  %3088 = vst [vmem:[%s5479_s19 + $0x50] sm:$0x7f] %v3075_v43  ;;  %v3046_v12 = vsel %vm3025_vm12, %v3039_v15, %v3045_v56  ;;  %v3052_v53 = vsel %vm3025_vm12, %v3045_v56, %v3051_v26 }
 0x252   : > { %v3073_v48 = vadd.f32 %v3046_v12, %v2994_v7  ;;  %v3076_v37 = vadd.f32 %v3052_v53, %v2997_v42 }
 0x254   : > { %3086 = vst.msk [vmem:[%s5479_s19 + $0x40] sm:$0xff] %vm3079_vm13, %v3073_v48 }
 0x255   : > { %3090 = vst.msk [vmem:[%s5479_s19 + $0x58] sm:$0x7f] %vm3089_vm14, %v3076_v37 }
 0x256 PF: > { %s12_s9 = sadd.s32 1, %s4319_s9  }
 0x257   : > { %p9_p4 = scmp.ge.s32.totalorder %s12_s9, 4  }
 0x259   :  { %11 = sbr.rel (!%p9_p4) target bundleno = 1 (0x1), region = 66 }

</bundles_post_ra>
